<compile_context>
chip_gen: v7x
topology: tpu7x:2x2x1
jax: 0.10.0
libtpu: 0.0.40
codegen_flags: <defaults>
</compile_context>

<pallas_src>
import functools

import jax
import jax.numpy as jnp
from jax.experimental import pallas as pl
from jax.experimental.pallas import tpu as pltpu


def sgc_kernel(adj_ref, x_ref, norm_ref, w_ref, b_ref, out_ref, *, k):
    """Fused k-hop symmetric-normalized propagation + final linear layer."""
    adj = adj_ref[...]                       # (Np, Np) bf16, fed straight to MXU
    norm = norm_ref[...]                     # (Np, 1) f32, deg^-0.5 (pads = 1)
    norm2 = norm * norm                      # folds dst-scale(h) with src-scale(h+1)

    feat = x_ref[...] * norm                 # src-scale for hop 0 (f32)
    # k is a small static constant -> fully unrolled straight-line code.
    for hop in range(k):
        agg = jnp.dot(adj, feat.astype(jnp.bfloat16),
                      preferred_element_type=jnp.float32)     # bf16 MXU, f32 acc
        feat = agg * (norm2 if hop + 1 < k else norm)

    # Final linear kept in f32 for accuracy; single lane-dense (Np, 128*m) store
    # (W/b were zero-padded in the wrapper, padded columns sliced off outside).
    out_ref[...] = (
        jnp.dot(feat, w_ref[...], preferred_element_type=jnp.float32)
        + b_ref[...]
    )


def _round_up(v, m):
    return ((v + m - 1) // m) * m


def sgc_forward(adj, x, w, b, *, k):
    """adj: (N, N) f32 with adj[dst, src]; x: (N, F_in); w: (F_in, F_out); b: (F_out,)."""
    N, f_in = x.shape
    f_out = w.shape[1]
    n_p = _round_up(N, 128)
    f_in_p = _round_up(f_in, 128)
    f_out_p = _round_up(f_out, 128)

    # Exact degrees from the f32 adjacency (one tiny XLA reduction, off the
    # kernel critical path; stays exact regardless of adjacency dtype).
    deg = jnp.sum(adj, axis=-1, keepdims=True)
    norm = jax.lax.rsqrt(jnp.maximum(deg, 1.0)).astype(jnp.float32)

    # Zero-pad to lane-dense shapes. Pad nodes: adjacency rows/cols and features
    # are 0, norm is set to 1 (deg 0 -> clamp 1), so they contribute nothing;
    # padded output rows/cols are sliced off below.
    adj_p = jnp.zeros((n_p, n_p), jnp.bfloat16).at[:N, :N].set(
        adj.astype(jnp.bfloat16))                        # 0/1 exact in bf16
    x_p = jnp.zeros((n_p, f_in_p), jnp.float32).at[:N, :f_in].set(x)
    norm_p = jnp.ones((n_p, 1), jnp.float32).at[:N, :].set(norm)
    w_p = jnp.zeros((f_in_p, f_out_p), jnp.float32).at[:f_in, :f_out].set(w)
    b_p = jnp.zeros((1, f_out_p), jnp.float32).at[:, :f_out].set(b)

    # Explicit scoped-VMEM limit: actual footprint (worst case 2 buffers per
    # input) x2 headroom, floored at 8 MiB, capped at v7x physical (64 MiB).
    bytes_needed = (
        2 * n_p * n_p * 2                     # adjacency (bf16)
        + 2 * n_p * f_in_p * 4                # x
        + 2 * n_p * 4                         # norm
        + 2 * f_in_p * f_out_p * 4            # w
        + 2 * f_out_p * 4                     # b
        + 2 * n_p * f_out_p * 4               # out
        + 4 * n_p * max(f_in_p, f_out_p) * 4  # in-kernel feat temporaries
    )
    vmem_limit = int(min(max(2 * bytes_needed, 8 << 20), 64 << 20))

    def build(single_buffer):
        def spec(shape):
            if single_buffer:
                # grid=(1,): nothing to pipeline, so single-buffer every input.
                return pl.BlockSpec(shape, lambda i: (0,) * len(shape),
                                    pipeline_mode=pl.Buffered(1))
            return pl.BlockSpec(shape, lambda i: (0,) * len(shape))

        return pl.pallas_call(
            functools.partial(sgc_kernel, k=k),
            out_shape=jax.ShapeDtypeStruct((n_p, f_out_p), jnp.float32),
            grid=(1,),
            in_specs=[
                spec((n_p, n_p)),        # adjacency (bf16)
                spec((n_p, f_in_p)),     # features
                spec((n_p, 1)),          # norm
                spec((f_in_p, f_out_p)), # W
                spec((1, f_out_p)),      # b
            ],
            out_specs=pl.BlockSpec((n_p, f_out_p), lambda i: (0, 0)),
            compiler_params=pltpu.CompilerParams(
                dimension_semantics=("arbitrary",),
                vmem_limit_bytes=vmem_limit),
        )

    try:
        out_padded = build(single_buffer=True)(adj_p, x_p, norm_p, w_p, b_p)
    except Exception:
        # Fallback if this jax build rejects pipeline_mode=pl.Buffered(1) on a
        # top-level pallas_call BlockSpec; default double-buffering is only a
        # VMEM-residency cost at grid=(1,), not a correctness issue.
        out_padded = build(single_buffer=False)(adj_p, x_p, norm_p, w_p, b_p)

    return out_padded[:N, :f_out]


def sgc_reference(adj, x, w, b, *, k):
    """Pure-JAX f32 reference mirroring DGL SGConv."""
    deg = jnp.sum(adj, axis=-1, keepdims=True)
    norm = jnp.power(jnp.maximum(deg, 1.0), -0.5)
    feat = x
    for _ in range(k):
        feat = norm * (adj @ (feat * norm))
    return feat @ w + b


if __name__ == "__main__":
    key = jax.random.PRNGKey(0)
    k_adj, k_x, k_w, k_b = jax.random.split(key, 4)

    # Module config: in_feats=128, hidden_lst=[32, 16]
    #   -> out_feats = hidden_lst[-1] = 16, k = len([in_feats] + hidden_lst) = 3
    N, in_feats = 64, 128
    hidden_lst = [32, 16]
    out_feats = hidden_lst[-1]
    k_hops = len([in_feats] + hidden_lst)

    # Random undirected-ish graph as dense adjacency (adj[dst, src]) + self loops.
    adj = (jax.random.uniform(k_adj, (N, N)) < 0.1).astype(jnp.float32)
    adj = jnp.maximum(adj, jnp.transpose(adj))
    adj = jnp.maximum(adj, jnp.eye(N, dtype=jnp.float32))

    x = jax.random.normal(k_x, (N, in_feats), jnp.float32)
    w = jax.random.normal(k_w, (in_feats, out_feats), jnp.float32) / jnp.sqrt(in_feats)
    b = jax.random.normal(k_b, (out_feats,), jnp.float32) * 0.1

    out = sgc_forward(adj, x, w, b, k=k_hops)
    jax.block_until_ready(out)

    ref = sgc_reference(adj, x, w, b, k=k_hops)
    assert out.shape == (N, out_feats)
    assert jnp.all(jnp.isfinite(out))
    assert jnp.allclose(out, ref, atol=2e-2, rtol=2e-2)
    print("KERNEL_OK")
</pallas_src>

<mosaic_0001>
module attributes {stable_mosaic.version = 11 : i64} {
  func.func @sgc_kernel(%arg0: i32, %arg1: memref<128x128xbf16, #tpu.memory_space<vmem>>, %arg2: memref<128x128xf32, #tpu.memory_space<vmem>>, %arg3: memref<128x1xf32, #tpu.memory_space<vmem>>, %arg4: memref<128x128xf32, #tpu.memory_space<vmem>>, %arg5: memref<1x128xf32, #tpu.memory_space<vmem>>, %arg6: memref<128x128xf32, #tpu.memory_space<vmem>>) attributes {dimension_semantics = [#tpu.dimension_semantics<arbitrary>], iteration_bounds = array<i64: 1>, scalar_prefetch = 0 : i64, scratch_operands = 0 : i64, tpu.core_type = #tpu.core_type<tc>, window_params = [{pipeline_mode = #tpu.pipeline_mode<synchronous>, transform_indices = @transform_0, window_bounds = array<i64: 128, 128>}, {pipeline_mode = #tpu.pipeline_mode<synchronous>, transform_indices = @transform_1, window_bounds = array<i64: 128, 128>}, {pipeline_mode = #tpu.pipeline_mode<synchronous>, transform_indices = @transform_2, window_bounds = array<i64: 128, 1>}, {pipeline_mode = #tpu.pipeline_mode<synchronous>, transform_indices = @transform_3, window_bounds = array<i64: 128, 128>}, {pipeline_mode = #tpu.pipeline_mode<synchronous>, transform_indices = @transform_4, window_bounds = array<i64: 1, 128>}, {pipeline_mode = #tpu.pipeline_mode<synchronous>, transform_indices = @transform_5, window_bounds = array<i64: 128, 128>}]} {
    %c0 = arith.constant 0 : index
    %c0_0 = arith.constant 0 : index
    %0 = vector.load %arg1[%c0, %c0_0] : memref<128x128xbf16, #tpu.memory_space<vmem>>, vector<128x128xbf16>
    %c0_1 = arith.constant 0 : index
    %c0_2 = arith.constant 0 : index
    %1 = vector.load %arg3[%c0_1, %c0_2] : memref<128x1xf32, #tpu.memory_space<vmem>>, vector<128x1xf32>
    %2 = arith.mulf %1, %1 : vector<128x1xf32>
    %c0_3 = arith.constant 0 : index
    %c0_4 = arith.constant 0 : index
    %3 = vector.load %arg2[%c0_3, %c0_4] : memref<128x128xf32, #tpu.memory_space<vmem>>, vector<128x128xf32>
    %4 = vector.broadcast %1 : vector<128x1xf32> to vector<128x128xf32>
    %5 = arith.mulf %3, %4 : vector<128x128xf32>
    %6 = arith.truncf %5 : vector<128x128xf32> to vector<128x128xbf16>
    %cst = arith.constant dense<0.000000e+00> : vector<128x128xf32>
    %7 = tpu.matmul %0, %6, %cst {dimension_numbers = #tpu.dot_dimension_numbers<[1], [0], [0], [1], [0, 0, 1, 1], [], []>} : vector<128x128xbf16>, vector<128x128xbf16>, vector<128x128xf32> -> vector<128x128xf32>
    %8 = vector.broadcast %2 : vector<128x1xf32> to vector<128x128xf32>
    %9 = arith.mulf %7, %8 : vector<128x128xf32>
    %10 = arith.truncf %9 : vector<128x128xf32> to vector<128x128xbf16>
    %cst_5 = arith.constant dense<0.000000e+00> : vector<128x128xf32>
    %11 = tpu.matmul %0, %10, %cst_5 {dimension_numbers = #tpu.dot_dimension_numbers<[1], [0], [0], [1], [0, 0, 1, 1], [], []>} : vector<128x128xbf16>, vector<128x128xbf16>, vector<128x128xf32> -> vector<128x128xf32>
    %12 = vector.broadcast %2 : vector<128x1xf32> to vector<128x128xf32>
    %13 = arith.mulf %11, %12 : vector<128x128xf32>
    %14 = arith.truncf %13 : vector<128x128xf32> to vector<128x128xbf16>
    %cst_6 = arith.constant dense<0.000000e+00> : vector<128x128xf32>
    %15 = tpu.matmul %0, %14, %cst_6 {dimension_numbers = #tpu.dot_dimension_numbers<[1], [0], [0], [1], [0, 0, 1, 1], [], []>} : vector<128x128xbf16>, vector<128x128xbf16>, vector<128x128xf32> -> vector<128x128xf32>
    %16 = vector.broadcast %1 : vector<128x1xf32> to vector<128x128xf32>
    %17 = arith.mulf %15, %16 : vector<128x128xf32>
    %c0_7 = arith.constant 0 : index
    %c0_8 = arith.constant 0 : index
    %18 = vector.load %arg4[%c0_7, %c0_8] : memref<128x128xf32, #tpu.memory_space<vmem>>, vector<128x128xf32>
    %cst_9 = arith.constant dense<0.000000e+00> : vector<128x128xf32>
    %19 = tpu.matmul %17, %18, %cst_9 {dimension_numbers = #tpu.dot_dimension_numbers<[1], [0], [0], [1], [0, 0, 1, 1], [], []>} : vector<128x128xf32>, vector<128x128xf32>, vector<128x128xf32> -> vector<128x128xf32>
    %c0_10 = arith.constant 0 : index
    %c0_11 = arith.constant 0 : index
    %20 = vector.load %arg5[%c0_10, %c0_11] : memref<1x128xf32, #tpu.memory_space<vmem>>, vector<1x128xf32>
    %21 = vector.broadcast %20 : vector<1x128xf32> to vector<128x128xf32>
    %22 = arith.addf %19, %21 : vector<128x128xf32>
    %c0_12 = arith.constant 0 : index
    %c0_13 = arith.constant 0 : index
    %23 = vector.load %arg6[%c0_12, %c0_13] : memref<128x128xf32, #tpu.memory_space<vmem>>, vector<128x128xf32>
    tpu.vector_store %arg6[%c0_12, %c0_13], %22 {strides = array<i32>} : memref<128x128xf32, #tpu.memory_space<vmem>>, vector<128x128xf32>,
    return
  }
  func.func @transform_0(%arg0: i32) -> (i32, i32) {
    %c0_i32 = arith.constant 0 : i32
    %c0_i32_0 = arith.constant 0 : i32
    %c0_i32_1 = arith.constant 0 : i32
    return %c0_i32, %c0_i32_0 : i32, i32
  }
  func.func @transform_1(%arg0: i32) -> (i32, i32) {
    %c0_i32 = arith.constant 0 : i32
    %c0_i32_0 = arith.constant 0 : i32
    %c0_i32_1 = arith.constant 0 : i32
    return %c0_i32, %c0_i32_0 : i32, i32
  }
  func.func @transform_2(%arg0: i32) -> (i32, i32) {
    %c0_i32 = arith.constant 0 : i32
    %c0_i32_0 = arith.constant 0 : i32
    %c0_i32_1 = arith.constant 0 : i32
    return %c0_i32, %c0_i32_0 : i32, i32
  }
  func.func @transform_3(%arg0: i32) -> (i32, i32) {
    %c0_i32 = arith.constant 0 : i32
    %c0_i32_0 = arith.constant 0 : i32
    %c0_i32_1 = arith.constant 0 : i32
    return %c0_i32, %c0_i32_0 : i32, i32
  }
  func.func @transform_4(%arg0: i32) -> (i32, i32) {
    %c0_i32 = arith.constant 0 : i32
    %c0_i32_0 = arith.constant 0 : i32
    %c0_i32_1 = arith.constant 0 : i32
    return %c0_i32, %c0_i32_0 : i32, i32
  }
  func.func @transform_5(%arg0: i32) -> (i32, i32) {
    %c0_i32 = arith.constant 0 : i32
    %c0_i32_0 = arith.constant 0 : i32
    %c0_i32_1 = arith.constant 0 : i32
    return %c0_i32, %c0_i32_0 : i32, i32
  }
}

module attributes {stable_mosaic.version = 11 : i64} {
  func.func @sgc_kernel(%arg0: i32, %arg1: memref<128x128xbf16, #tpu.memory_space<vmem>>, %arg2: memref<128x128xf32, #tpu.memory_space<vmem>>, %arg3: memref<128x1xf32, #tpu.memory_space<vmem>>, %arg4: memref<128x128xf32, #tpu.memory_space<vmem>>, %arg5: memref<1x128xf32, #tpu.memory_space<vmem>>, %arg6: memref<128x128xf32, #tpu.memory_space<vmem>>) attributes {dimension_semantics = [#tpu.dimension_semantics<arbitrary>], iteration_bounds = array<i64: 1>, scalar_prefetch = 0 : i64, scratch_operands = 0 : i64, tpu.core_type = #tpu.core_type<tc>, window_params = [{pipeline_mode = #tpu.pipeline_mode<synchronous>, transform_indices = @transform_0, window_bounds = array<i64: 128, 128>}, {pipeline_mode = #tpu.pipeline_mode<synchronous>, transform_indices = @transform_1, window_bounds = array<i64: 128, 128>}, {pipeline_mode = #tpu.pipeline_mode<synchronous>, transform_indices = @transform_2, window_bounds = array<i64: 128, 1>}, {pipeline_mode = #tpu.pipeline_mode<synchronous>, transform_indices = @transform_3, window_bounds = array<i64: 128, 128>}, {pipeline_mode = #tpu.pipeline_mode<synchronous>, transform_indices = @transform_4, window_bounds = array<i64: 1, 128>}, {pipeline_mode = #tpu.pipeline_mode<synchronous>, transform_indices = @transform_5, window_bounds = array<i64: 128, 128>}]} {
    %c0 = arith.constant 0 : index
    %c0_0 = arith.constant 0 : index
    %0 = vector.load %arg1[%c0, %c0_0] : memref<128x128xbf16, #tpu.memory_space<vmem>>, vector<128x128xbf16>
    %c0_1 = arith.constant 0 : index
    %c0_2 = arith.constant 0 : index
    %1 = vector.load %arg3[%c0_1, %c0_2] : memref<128x1xf32, #tpu.memory_space<vmem>>, vector<128x1xf32>
    %2 = arith.mulf %1, %1 : vector<128x1xf32>
    %c0_3 = arith.constant 0 : index
    %c0_4 = arith.constant 0 : index
    %3 = vector.load %arg2[%c0_3, %c0_4] : memref<128x128xf32, #tpu.memory_space<vmem>>, vector<128x128xf32>
    %4 = vector.broadcast %1 : vector<128x1xf32> to vector<128x128xf32>
    %5 = arith.mulf %3, %4 : vector<128x128xf32>
    %6 = arith.truncf %5 : vector<128x128xf32> to vector<128x128xbf16>
    %cst = arith.constant dense<0.000000e+00> : vector<128x128xf32>
    %7 = tpu.matmul %0, %6, %cst {dimension_numbers = #tpu.dot_dimension_numbers<[1], [0], [0], [1], [0, 0, 1, 1], [], []>} : vector<128x128xbf16>, vector<128x128xbf16>, vector<128x128xf32> -> vector<128x128xf32>
    %8 = vector.broadcast %2 : vector<128x1xf32> to vector<128x128xf32>
    %9 = arith.mulf %7, %8 : vector<128x128xf32>
    %10 = arith.truncf %9 : vector<128x128xf32> to vector<128x128xbf16>
    %cst_5 = arith.constant dense<0.000000e+00> : vector<128x128xf32>
    %11 = tpu.matmul %0, %10, %cst_5 {dimension_numbers = #tpu.dot_dimension_numbers<[1], [0], [0], [1], [0, 0, 1, 1], [], []>} : vector<128x128xbf16>, vector<128x128xbf16>, vector<128x128xf32> -> vector<128x128xf32>
    %12 = vector.broadcast %2 : vector<128x1xf32> to vector<128x128xf32>
    %13 = arith.mulf %11, %12 : vector<128x128xf32>
    %14 = arith.truncf %13 : vector<128x128xf32> to vector<128x128xbf16>
    %cst_6 = arith.constant dense<0.000000e+00> : vector<128x128xf32>
    %15 = tpu.matmul %0, %14, %cst_6 {dimension_numbers = #tpu.dot_dimension_numbers<[1], [0], [0], [1], [0, 0, 1, 1], [], []>} : vector<128x128xbf16>, vector<128x128xbf16>, vector<128x128xf32> -> vector<128x128xf32>
    %16 = vector.broadcast %1 : vector<128x1xf32> to vector<128x128xf32>
    %17 = arith.mulf %15, %16 : vector<128x128xf32>
    %c0_7 = arith.constant 0 : index
    %c0_8 = arith.constant 0 : index
    %18 = vector.load %arg4[%c0_7, %c0_8] : memref<128x128xf32, #tpu.memory_space<vmem>>, vector<128x128xf32>
    %cst_9 = arith.constant dense<0.000000e+00> : vector<128x128xf32>
    %19 = tpu.matmul %17, %18, %cst_9 {dimension_numbers = #tpu.dot_dimension_numbers<[1], [0], [0], [1], [0, 0, 1, 1], [], []>} : vector<128x128xf32>, vector<128x128xf32>, vector<128x128xf32> -> vector<128x128xf32>
    %c0_10 = arith.constant 0 : index
    %c0_11 = arith.constant 0 : index
    %20 = vector.load %arg5[%c0_10, %c0_11] : memref<1x128xf32, #tpu.memory_space<vmem>>, vector<1x128xf32>
    %21 = vector.broadcast %20 : vector<1x128xf32> to vector<128x128xf32>
    %22 = arith.addf %19, %21 : vector<128x128xf32>
    %c0_12 = arith.constant 0 : index
    %c0_13 = arith.constant 0 : index
    %23 = vector.load %arg6[%c0_12, %c0_13] : memref<128x128xf32, #tpu.memory_space<vmem>>, vector<128x128xf32>
    tpu.vector_store %arg6[%c0_12, %c0_13], %22 {strides = array<i32>} : memref<128x128xf32, #tpu.memory_space<vmem>>, vector<128x128xf32>,
    return
  }
  func.func @transform_0(%arg0: i32) -> (i32, i32) {
    %c0_i32 = arith.constant 0 : i32
    %c0_i32_0 = arith.constant 0 : i32
    %c0_i32_1 = arith.constant 0 : i32
    return %c0_i32, %c0_i32_0 : i32, i32
  }
  func.func @transform_1(%arg0: i32) -> (i32, i32) {
    %c0_i32 = arith.constant 0 : i32
    %c0_i32_0 = arith.constant 0 : i32
    %c0_i32_1 = arith.constant 0 : i32
    return %c0_i32, %c0_i32_0 : i32, i32
  }
  func.func @transform_2(%arg0: i32) -> (i32, i32) {
    %c0_i32 = arith.constant 0 : i32
    %c0_i32_0 = arith.constant 0 : i32
    %c0_i32_1 = arith.constant 0 : i32
    return %c0_i32, %c0_i32_0 : i32, i32
  }
  func.func @transform_3(%arg0: i32) -> (i32, i32) {
    %c0_i32 = arith.constant 0 : i32
    %c0_i32_0 = arith.constant 0 : i32
    %c0_i32_1 = arith.constant 0 : i32
    return %c0_i32, %c0_i32_0 : i32, i32
  }
  func.func @transform_4(%arg0: i32) -> (i32, i32) {
    %c0_i32 = arith.constant 0 : i32
    %c0_i32_0 = arith.constant 0 : i32
    %c0_i32_1 = arith.constant 0 : i32
    return %c0_i32, %c0_i32_0 : i32, i32
  }
  func.func @transform_5(%arg0: i32) -> (i32, i32) {
    %c0_i32 = arith.constant 0 : i32
    %c0_i32_0 = arith.constant 0 : i32
    %c0_i32_1 = arith.constant 0 : i32
    return %c0_i32, %c0_i32_0 : i32, i32
  }
}

</mosaic_0001>

<bundles_post_ra>
// kernel: tpu_custom_call.1
= control target key start
LH: loop header
LB: loop body
LE: loop exit
PB: predicated region body
PF: predicated region fallthrough
CT: control target
= control target key end

     0   :  { %10 = vsyncpa [#allocation3], 0  ;;  %s1613_s0 = inlined_call_operand.hbm [shape: bf16[128,128], index: 0, kind: input, shape index: {}]   ;;  %s1614_s1 = inlined_call_operand.vmem [shape: f32[128,128], index: 1, kind: input, shape index: {}]   ;;  %s1615_s2 = inlined_call_operand.vmem [shape: f32[128,1], index: 2, kind: input, shape index: {}]   ;;  %s1616_s3 = inlined_call_operand.hbm [shape: f32[128,128], index: 3, kind: input, shape index: {}]   ;;  %s1617_s4 = inlined_call_operand.vmem [shape: f32[1,128], index: 4, kind: input, shape index: {}]   ;;  %s1618_s5 = inlined_call_operand.hbm [shape: f32[128,128], index: 5, kind: output, shape index: {}]  }
   0x1   :  { %11 = vsyncpa [#allocation6], 0 }
   0x2   :  { %12 = vsyncpa [#allocation4], 0  ;;  %s1266_s18 = smov [#allocation2]   ;;  %s1194_s22 = scalar_lea.hbm %s1613_s0, 1024 }
   0x3   :  { %s18_s19 = sshll.u32 %s1266_s18, 4  ;;  %p1195_p0 = scmp.ne.s32.totalorder %s1613_s0, %s1194_s22  ;;  %s19_s19 = int_to_ptr.vmem [resolvable:$true] %s18_s19 }
   0x4   :  { %p1198_p1 = scmp.lt.u32.totalorder %s1194_s22, %s1613_s0 }
   0x6   :  { %p1200_p2 = pnand %p1198_p1, %p1195_p0 }
   0x8   :  { %1203 = shalt.err (!%p1200_p2)
}
   0x9   :  { %s1204_s27 = scalar_lea.vmem %s19_s19, 1024  ;;  %p1209_p4 = scmp.lt.s32.totalorder %s19_s19, %s19_s19 }
   0xa   :  { %p1205_p3 = scmp.ne.s32.totalorder %s19_s19, %s1204_s27  ;;  %p1210_p5 = scmp.lt.s32.totalorder %s1204_s27, %s1204_s27 }
   0xc   :  { %p1211_p6 = por %p1210_p5, %p1209_p4 }
   0xe   :  { %p1212_p7 = pnand %p1211_p6, %p1205_p3 }
  0x10   :  { %1215 = shalt.err (!%p1212_p7)
}
  0x11   :  { %s1267_s28 = smov 64   ;;  %s1268_s29 = smov 4  }
  0x12   :  { %24 = dma.hbm_to_vmem [thread:$0]  %s1613_s0, 1024, %s19_s19, [#allocation3], %s1267_s28, %s1267_s28, %s1268_s29  }
  0x13   :  { %s1269_s7 = smov [#allocation5]   ;;  %s1216_s11 = scalar_lea.hbm %s1616_s3, 2048 }
  0x14   :  { %s34_s8 = sshll.u32 %s1269_s7, 4  ;;  %p1217_p8 = scmp.ne.s32.totalorder %s1616_s3, %s1216_s11  ;;  %s35_s8 = int_to_ptr.vmem [resolvable:$true] %s34_s8 }
  0x15   :  { %p1220_p9 = scmp.lt.u32.totalorder %s1216_s11, %s1616_s3 }
  0x17   :  { %p1222_p10 = pnand %p1220_p9, %p1217_p8 }
  0x19   :  { %1225 = shalt.err (!%p1222_p10)
}
  0x1a   :  { %s1226_s16 = scalar_lea.vmem %s35_s8, 2048  ;;  %p1231_p12 = scmp.lt.s32.totalorder %s35_s8, %s35_s8 }
  0x1b   :  { %p1227_p11 = scmp.ne.s32.totalorder %s35_s8, %s1226_s16  ;;  %p1232_p13 = scmp.lt.s32.totalorder %s1226_s16, %s1226_s16 }
  0x1d   :  { %p1233_p0 = por %p1232_p13, %p1231_p12 }
  0x1f   :  { %p1234_p1 = pnand %p1233_p0, %p1227_p11 }
  0x21   :  { %1237 = shalt.err (!%p1234_p1)
}
  0x22   :  { %s1270_s0 = smov 128   ;;  %s1271_s17 = smov 8  }
  0x23   :  { %40 = dma.hbm_to_vmem [thread:$0]  %s1616_s3, 2048, %s35_s8, [#allocation6], %s1270_s0, %s1270_s0, %s1271_s17  }
  0x24   :  { %1260 = dma.done.wait [#allocation3], 1024  }
  0x25   :  { %1261 = vsyncadd [#allocation3], 4294966272 }
  0x26   :  { %1262 = dma.done.wait [#allocation6], 2048  }
  0x27   :  { %1263 = vsyncadd [#allocation6], 4294965248  ;;  %v1272_v0 = vmov 0   ;;  %v68_v1 = vld [vmem:[%s1615_s2 + $0x10] sm:$0xff]  ;;  %v66_v2 = vld [vmem:[%s1615_s2] sm:$0xff] }
  0x28   :  { %1185 = vset.pattern.permute.xlu1 %v1272_v0  ;;  %1184 = vset.pattern.permute.xlu0 %v1272_v0  ;;  %v69_v3 = vld [vmem:[%s1615_s2 + $0x18] sm:$0xff]  ;;  %v67_v4 = vld [vmem:[%s1615_s2 + $0x8] sm:$0xff]  ;;  %v70_v6 = vld [vmem:[%s1615_s2 + $0x20] sm:$0xff]  ;;  %v82_v17 = vmul.f32 %v66_v2, %v66_v2  ;;  %v84_v19 = vmul.f32 %v68_v1, %v68_v1 }
  0x29   :  { %126 = vperm.xlu1 %1185, %v68_v1   ;;  %116 = vperm.xlu0 %1184, %v66_v2   ;;  %v71_v5 = vld [vmem:[%s1615_s2 + $0x28] sm:$0xff]  ;;  %v73_v7 = vld [vmem:[%s1615_s2 + $0x38] sm:$0xff]  ;;  %v72_v8 = vld [vmem:[%s1615_s2 + $0x30] sm:$0xff]  ;;  %v83_v18 = vmul.f32 %v67_v4, %v67_v4  ;;  %v85_v20 = vmul.f32 %v69_v3, %v69_v3  ;;  %v86_v22 = vmul.f32 %v70_v6, %v70_v6 }
  0x2a   :  { %v75_v9 = vld [vmem:[%s1615_s2 + $0x48] sm:$0xff]  ;;  %v74_v10 = vld [vmem:[%s1615_s2 + $0x40] sm:$0xff]  ;;  %v77_v11 = vld [vmem:[%s1615_s2 + $0x58] sm:$0xff]  ;;  %v87_v21 = vmul.f32 %v71_v5, %v71_v5  ;;  %v89_v24 = vmul.f32 %v73_v7, %v73_v7  ;;  %v88_v25 = vmul.f32 %v72_v8, %v72_v8 }
  0x2b   :  { %v76_v12 = vld [vmem:[%s1615_s2 + $0x50] sm:$0xff]  ;;  %v79_v13 = vld [vmem:[%s1615_s2 + $0x68] sm:$0xff]  ;;  %v78_v14 = vld [vmem:[%s1615_s2 + $0x60] sm:$0xff]  ;;  %v91_v26 = vmul.f32 %v75_v9, %v75_v9  ;;  %v90_v27 = vmul.f32 %v74_v10, %v74_v10  ;;  %v93_v28 = vmul.f32 %v77_v11, %v77_v11 }
  0x2c   :  { %v81_v15 = vld [vmem:[%s1615_s2 + $0x78] sm:$0xff]  ;;  %v80_v16 = vld [vmem:[%s1615_s2 + $0x70] sm:$0xff]  ;;  %v1379_v23 = vld [vmem:[#allocation2] sm:$0xff]   ;;  %v92_v29 = vmul.f32 %v76_v12, %v76_v12  ;;  %v95_v30 = vmul.f32 %v79_v13, %v79_v13  ;;  %v94_v31 = vmul.f32 %v78_v14, %v78_v14 }
  0x2d   :  { %131 = vperm.xlu1 %1185, %v69_v3   ;;  %121 = vperm.xlu0 %1184, %v67_v4   ;;  %v97_v32 = vmul.f32 %v81_v15, %v81_v15  ;;  %v96_v33 = vmul.f32 %v80_v16, %v80_v16  ;;  %v100_v36 = vld [vmem:[%s1614_s1 + $0x10] sm:$0xff]  ;;  %v98_v37 = vld [vmem:[%s1614_s1] sm:$0xff]  ;;  %v101_v38 = vld [vmem:[%s1614_s1 + $0x18] sm:$0xff] }
  0x2e   :  { %1008 = vmatprep.mubr.bf16.mxu0 %v1379_v23  ;;  %1040 = vmatprep.mubr.bf16.mxu1 %v1379_v23  ;;  %v99_v39 = vld [vmem:[%s1614_s1 + $0x8] sm:$0xff]  ;;  %v102_v47 = vld [vmem:[%s1614_s1 + $0x20] sm:$0xff]  ;;  %v105_v54 = vld [vmem:[%s1614_s1 + $0x38] sm:$0xff] }
  0x2f   :  { %v103_v46 = vld [vmem:[%s1614_s1 + $0x28] sm:$0xff]  ;;  %v104_v55 = vld [vmem:[%s1614_s1 + $0x30] sm:$0xff]  ;;  %v106_v62 = vld [vmem:[%s1614_s1 + $0x40] sm:$0xff] }
  0x30   :  { %v107_v61 = vld [vmem:[%s1614_s1 + $0x48] sm:$0xff]  ;;  %v109_v4 = vld [vmem:[%s1614_s1 + $0x58] sm:$0xff] }
  0x31   :  { %141 = vperm.xlu1 %1185, %v71_v5   ;;  %136 = vperm.xlu0 %1184, %v70_v6   ;;  %v108_v5 = vld [vmem:[%s1614_s1 + $0x50] sm:$0xff] }
  0x35   :  { %151 = vperm.xlu1 %1185, %v73_v7   ;;  %146 = vperm.xlu0 %1184, %v72_v8  }
  0x39   :  { %161 = vperm.xlu1 %1185, %v75_v9   ;;  %156 = vperm.xlu0 %1184, %v74_v10  }
  0x3d   :  { %171 = vperm.xlu1 %1185, %v77_v11   ;;  %166 = vperm.xlu0 %1184, %v76_v12   ;;  %v111_v11 = vld [vmem:[%s1614_s1 + $0x68] sm:$0xff]  ;;  %v110_v12 = vld [vmem:[%s1614_s1 + $0x60] sm:$0xff] }
  0x41   :  { %181 = vperm.xlu1 %1185, %v79_v13   ;;  %176 = vperm.xlu0 %1184, %v78_v14  }
  0x45   :  { %191 = vperm.xlu1 %1185, %v81_v15   ;;  %186 = vperm.xlu0 %1184, %v80_v16  }
  0x49   :  { %370 = vperm.xlu1 %1185, %v83_v18   ;;  %365 = vperm.xlu0 %1184, %v82_v17   ;;  %v113_v18 = vld [vmem:[%s1614_s1 + $0x78] sm:$0xff] }
  0x4d   :  { %380 = vperm.xlu1 %1185, %v85_v20   ;;  %375 = vperm.xlu0 %1184, %v84_v19   ;;  %v112_v19 = vld [vmem:[%s1614_s1 + $0x70] sm:$0xff] }
  0x51   :  { %390 = vperm.xlu1 %1185, %v87_v21   ;;  %385 = vperm.xlu0 %1184, %v86_v22  }
  0x55   :  { %400 = vperm.xlu1 %1185, %v89_v24   ;;  %395 = vperm.xlu0 %1184, %v88_v25  }
  0x59   :  { %410 = vperm.xlu1 %1185, %v91_v26   ;;  %405 = vperm.xlu0 %1184, %v90_v27   ;;  %v1479_v27 = vld [vmem:[#allocation2 + $0x8] sm:$0xff]  }
  0x5d   :  { %420 = vperm.xlu1 %1185, %v93_v28   ;;  %415 = vperm.xlu0 %1184, %v92_v29   ;;  %v1481_v28 = vld [vmem:[#allocation2 + $0x10] sm:$0xff]   ;;  %v1485_v29 = vld [vmem:[#allocation2 + $0x18] sm:$0xff]  }
  0x61   :  { %430 = vperm.xlu1 %1185, %v95_v30   ;;  %425 = vperm.xlu0 %1184, %v94_v31   ;;  %v1487_v30 = vld [vmem:[#allocation2 + $0x20] sm:$0xff]   ;;  %v1491_v31 = vld [vmem:[#allocation2 + $0x28] sm:$0xff]  }
  0x65   :  { %440 = vperm.xlu1 %1185, %v97_v32   ;;  %435 = vperm.xlu0 %1184, %v96_v33   ;;  %v1493_v32 = vld [vmem:[#allocation2 + $0x30] sm:$0xff]   ;;  %v1497_v33 = vld [vmem:[#allocation2 + $0x38] sm:$0xff]  }
  0xa8   :  { %v1383_v34 = vpop.permute.xlu1 %126  ;;  %v1385_v35 = vpop.permute.xlu0 %116 }
  0xa9   :  { %v196_v42 = vmul.f32 %v1383_v34, %v100_v36  ;;  %v194_v43 = vmul.f32 %v1385_v35, %v98_v37 }
  0xac   :  { %v1399_v40 = vpop.permute.xlu1 %131  ;;  %v1401_v41 = vpop.permute.xlu0 %121 }
  0xad   :  { %v197_v44 = vmul.f32 %v1399_v40, %v101_v38  ;;  %v195_v45 = vmul.f32 %v1401_v41, %v99_v39 }
  0xaf   :  { %v210_v48 = vpack.c.bf16 %v195_v45, %v194_v43  ;;  %v211_v51 = vpack.c.bf16 %v197_v44, %v196_v42 }
  0xb0   :  { %v1413_v49 = vpop.permute.xlu1 %141  ;;  %v1415_v50 = vpop.permute.xlu0 %136 }
  0xb1   :  { %v199_v52 = vmul.f32 %v1413_v49, %v103_v46  ;;  %v198_v53 = vmul.f32 %v1415_v50, %v102_v47  ;;  %992 = vmatprep.subr.bf16.mxu0 %v210_v48 }
  0xb2   :  { %993 = vmatpush3.bf16.msra.mxu0 %v210_v48 }
  0xb3   :  { %994 = vmatprep.subr.bf16.mxu0 %v211_v51  ;;  %v212_v58 = vpack.c.bf16 %v199_v52, %v198_v53 }
  0xb4   :  { %v1425_v56 = vpop.permute.xlu1 %151  ;;  %v1427_v57 = vpop.permute.xlu0 %146 }
  0xb5   :  { %v201_v59 = vmul.f32 %v1425_v56, %v105_v54  ;;  %v200_v60 = vmul.f32 %v1427_v57, %v104_v55 }
  0xb6   :  { %995 = vmatpush3.bf16.msra.mxu0 %v211_v51 }
  0xb7   :  { %996 = vmatprep.subr.bf16.mxu0 %v212_v58  ;;  %v213_v1 = vpack.c.bf16 %v201_v59, %v200_v60 }
  0xb8   :  { %v1437_v63 = vpop.permute.xlu1 %161  ;;  %v1439_v0 = vpop.permute.xlu0 %156 }
  0xb9   :  { %v203_v2 = vmul.f32 %v1437_v63, %v107_v61  ;;  %v202_v3 = vmul.f32 %v1439_v0, %v106_v62 }
  0xba   :  { %997 = vmatpush3.bf16.msra.mxu0 %v212_v58 }
  0xbb   :  { %998 = vmatprep.subr.bf16.mxu0 %v213_v1  ;;  %v214_v8 = vpack.c.bf16 %v203_v2, %v202_v3 }
  0xbc   :  { %v1449_v6 = vpop.permute.xlu1 %171  ;;  %v1451_v7 = vpop.permute.xlu0 %166 }
  0xbd   :  { %v205_v9 = vmul.f32 %v1449_v6, %v109_v4  ;;  %v204_v10 = vmul.f32 %v1451_v7, %v108_v5 }
  0xbe   :  { %999 = vmatpush3.bf16.msra.mxu0 %v213_v1 }
  0xbf   :  { %1000 = vmatprep.subr.bf16.mxu0 %v214_v8  ;;  %v215_v15 = vpack.c.bf16 %v205_v9, %v204_v10 }
  0xc0   :  { %v1461_v13 = vpop.permute.xlu1 %181  ;;  %v1463_v14 = vpop.permute.xlu0 %176 }
  0xc1   :  { %v207_v16 = vmul.f32 %v1461_v13, %v111_v11  ;;  %v206_v17 = vmul.f32 %v1463_v14, %v110_v12 }
  0xc2   :  { %1001 = vmatpush3.bf16.msra.mxu0 %v214_v8 }
  0xc3   :  { %1002 = vmatprep.subr.bf16.mxu0 %v215_v15  ;;  %v216_v22 = vpack.c.bf16 %v207_v16, %v206_v17 }
  0xc4   :  { %v1473_v20 = vpop.permute.xlu1 %191  ;;  %v1475_v21 = vpop.permute.xlu0 %186 }
  0xc5   :  { %v209_v24 = vmul.f32 %v1473_v20, %v113_v18  ;;  %v208_v25 = vmul.f32 %v1475_v21, %v112_v19 }
  0xc6   :  { %1003 = vmatpush3.bf16.msra.mxu0 %v215_v15 }
  0xc7   :  { %1004 = vmatprep.subr.bf16.mxu0 %v216_v22  ;;  %v217_v26 = vpack.c.bf16 %v209_v24, %v208_v25 }
  0xc8   :  { %v1501_v36 = vpop.permute.xlu1 %370  ;;  %v1503_v37 = vpop.permute.xlu0 %365 }
  0xca   :  { %1005 = vmatpush3.bf16.msra.mxu0 %v216_v22 }
  0xcb   :  { %1006 = vmatprep.subr.bf16.mxu0 %v217_v26 }
  0xcc   :  { %v1505_v38 = vpop.permute.xlu1 %380  ;;  %v1507_v39 = vpop.permute.xlu0 %375 }
  0xce   :  { %1007 = vmatpush3.bf16.msra.mxu0 %v217_v26 }
  0xd0   :  { %v1509_v42 = vpop.permute.xlu1 %390  ;;  %v1511_v43 = vpop.permute.xlu0 %385 }
  0xd1   :  { %1009 = vmatmul.mubr.bf16.vlgmr.msra.gmra.mrb[0].mxu0 %v1479_v27 }
  0xd2   :  { %1012 = vmatprep.mubr.bf16.mxu0 %v1481_v28 }
  0xd4   :  { %v1513_v45 = vpop.permute.xlu1 %400  ;;  %v1515_v47 = vpop.permute.xlu0 %395 }
  0xd8   :  { %v1521_v59 = vpop.permute.xlu1 %410  ;;  %v1523_v60 = vpop.permute.xlu0 %405 }
  0xd9   :  { %1013 = vmatmul.mubr.bf16.gmra.mrb[4].mxu0 %v1485_v29 }
  0xda   :  { %1016 = vmatprep.mubr.bf16.mxu0 %v1487_v30 }
  0xdc   :  { %v1529_v9 = vpop.permute.xlu1 %420  ;;  %v1531_v11 = vpop.permute.xlu0 %415 }
  0xe0   :  { %v1533_v18 = vpop.permute.xlu1 %430  ;;  %v1537_v25 = vpop.permute.xlu0 %425 }
  0xe1   :  { %1017 = vmatmul.mubr.bf16.gmra.mrb[8].mxu0 %v1491_v31 }
  0xe2   :  { %1020 = vmatprep.mubr.bf16.mxu0 %v1493_v32 }
  0xe9   :  { %1021 = vmatmul.mubr.bf16.gmra.mrb[12].mxu0 %v1497_v33 }
  0xea   :  { %1072 = vmatprep.mubr.bf16.mxu0 %v1379_v23 }
 0x1a4   :  { %v1010_v44 = vpop.f32.mrb[0].mxu0 }
 0x1a5   :  { %v300_v46 = vpop.f32.mrb[1].mxu0  ;;  %v445_v23 = vmul.f32 %v1010_v44, %v1507_v39 }
 0x1a6   :  { %v1011_v48 = vpop.f32.mrb[2].mxu0  ;;  %v443_v53 = vmul.f32 %v1503_v37, %v300_v46 }
 0x1a7   :  { %v446_v51 = vmul.f32 %v1011_v48, %v1505_v38  ;;  %v303_v52 = vpop.f32.mrb[3].mxu0 }
 0x1a8   :  { %v444_v54 = vmul.f32 %v1501_v36, %v303_v52 }
 0x1a9   :  { %v460_v55 = vpack.c.bf16 %v446_v51, %v445_v23  ;;  %v1541_v51 = vpop.permute.xlu1 %440 }
 0x1aa   :  { %v459_v58 = vpack.c.bf16 %v444_v54, %v443_v53  ;;  %v1543_v53 = vpop.permute.xlu0 %435 }
 0x1ac   :  { %v1014_v61 = vpop.f32.mrb[4].mxu0  ;;  %1024 = vmatprep.subr.bf16.mxu1 %v459_v58 }
 0x1ad   :  { %v316_v62 = vpop.f32.mrb[5].mxu0  ;;  %1025 = vmatpush3.bf16.msra.mxu1 %v459_v58  ;;  %v449_v2 = vmul.f32 %v1014_v61, %v1515_v47 }
 0x1ae   :  { %v1015_v1 = vpop.f32.mrb[6].mxu0  ;;  %1026 = vmatprep.subr.bf16.mxu1 %v460_v55  ;;  %v447_v5 = vmul.f32 %v1511_v43, %v316_v62 }
 0x1af   :  { %v450_v3 = vmul.f32 %v1015_v1, %v1513_v45  ;;  %v319_v4 = vpop.f32.mrb[7].mxu0 }
 0x1b0   :  { %v448_v8 = vmul.f32 %v1509_v42, %v319_v4  ;;  %v701_v4 = vld [vmem:[#allocation5] sm:$0xff] }
 0x1b1   :  { %v462_v10 = vpack.c.bf16 %v450_v3, %v449_v2  ;;  %1027 = vmatpush3.bf16.msra.mxu1 %v460_v55 }
 0x1b2   :  { %v461_v12 = vpack.c.bf16 %v448_v8, %v447_v5  ;;  %v702_v5 = vld [vmem:[#allocation5 + $0x8] sm:$0xff]  ;;  %v703_v8 = vld [vmem:[#allocation5 + $0x10] sm:$0xff] }
 0x1b4   :  { %v1018_v15 = vpop.f32.mrb[8].mxu0  ;;  %1028 = vmatprep.subr.bf16.mxu1 %v461_v12 }
 0x1b5   :  { %v332_v16 = vpop.f32.mrb[9].mxu0  ;;  %1029 = vmatpush3.bf16.msra.mxu1 %v461_v12  ;;  %v453_v19 = vmul.f32 %v1018_v15, %v1531_v11  ;;  %v704_v12 = vld [vmem:[#allocation5 + $0x18] sm:$0xff] }
 0x1b6   :  { %v1019_v17 = vpop.f32.mrb[10].mxu0  ;;  %1030 = vmatprep.subr.bf16.mxu1 %v462_v10  ;;  %v451_v26 = vmul.f32 %v1523_v60, %v332_v16  ;;  %v1148_v15 = vpack.c.bf16 %v704_v12, %v703_v8  ;;  %v705_v16 = vld [vmem:[#allocation5 + $0x20] sm:$0xff] }
 0x1b7   :  { %v454_v22 = vmul.f32 %v1019_v17, %v1529_v9  ;;  %v335_v24 = vpop.f32.mrb[11].mxu0  ;;  %v706_v17 = vld [vmem:[#allocation5 + $0x28] sm:$0xff] }
 0x1b8   :  { %v452_v44 = vmul.f32 %v1521_v59, %v335_v24  ;;  %v708_v24 = vld [vmem:[#allocation5 + $0x38] sm:$0xff] }
 0x1b9   :  { %v464_v46 = vpack.c.bf16 %v454_v22, %v453_v19  ;;  %1031 = vmatpush3.bf16.msra.mxu1 %v462_v10  ;;  %v1144_v10 = vpack.c.bf16 %v702_v5, %v701_v4  ;;  %v1152_v19 = vpack.c.bf16 %v706_v17, %v705_v16  ;;  %v707_v22 = vld [vmem:[#allocation5 + $0x30] sm:$0xff] }
 0x1ba   :  { %v463_v48 = vpack.c.bf16 %v452_v44, %v451_v26  ;;  %v1156_v26 = vpack.c.bf16 %v708_v24, %v707_v22  ;;  %v709_v44 = vld [vmem:[#allocation5 + $0x40] sm:$0xff] }
 0x1bc   :  { %v1022_v23 = vpop.f32.mrb[12].mxu0  ;;  %1032 = vmatprep.subr.bf16.mxu1 %v463_v48 }
 0x1bd   :  { %v348_v52 = vpop.f32.mrb[13].mxu0  ;;  %1033 = vmatpush3.bf16.msra.mxu1 %v463_v48  ;;  %v457_v55 = vmul.f32 %v1022_v23, %v1543_v53  ;;  %v711_v23 = vld [vmem:[#allocation5 + $0x50] sm:$0xff] }
 0x1be   :  { %v1023_v54 = vpop.f32.mrb[14].mxu0  ;;  %1034 = vmatprep.subr.bf16.mxu1 %v464_v46  ;;  %v455_v62 = vmul.f32 %v1537_v25, %v348_v52  ;;  %v712_v52 = vld [vmem:[#allocation5 + $0x58] sm:$0xff] }
 0x1bf   :  { %v458_v58 = vmul.f32 %v1023_v54, %v1541_v51  ;;  %v351_v61 = vpop.f32.mrb[15].mxu0  ;;  %v1164_v54 = vpack.c.bf16 %v712_v52, %v711_v23 }
 0x1c0   :  { %v456_v1 = vmul.f32 %v1533_v18, %v351_v61 }
 0x1c1   :  { %v466_v2 = vpack.c.bf16 %v458_v58, %v457_v55  ;;  %1035 = vmatpush3.bf16.msra.mxu1 %v464_v46  ;;  %v710_v46 = vld [vmem:[#allocation5 + $0x48] sm:$0xff]  ;;  %v713_v55 = vld [vmem:[#allocation5 + $0x60] sm:$0xff] }
 0x1c2   :  { %v465_v3 = vpack.c.bf16 %v456_v1, %v455_v62  ;;  %v1160_v48 = vpack.c.bf16 %v710_v46, %v709_v44  ;;  %v714_v58 = vld [vmem:[#allocation5 + $0x68] sm:$0xff] }
 0x1c3   :  { %v1168_v61 = vpack.c.bf16 %v714_v58, %v713_v55 }
 0x1c4   :  { %1036 = vmatprep.subr.bf16.mxu1 %v465_v3 }
 0x1c5   :  { %1037 = vmatpush3.bf16.msra.mxu1 %v465_v3 }
 0x1c6   :  { %1038 = vmatprep.subr.bf16.mxu1 %v466_v2 }
 0x1c9   :  { %1039 = vmatpush3.bf16.msra.mxu1 %v466_v2 }
 0x1ca   :  { %1145 = vmatprep.subr.bf16.mxu1 %v1144_v10 }
 0x1cc   :  { %1041 = vmatmul.mubr.bf16.vlgmr.msra.gmra.mrb[0].mxu1 %v1479_v27 }
 0x1cd   :  { %1044 = vmatprep.mubr.bf16.mxu1 %v1481_v28  ;;  %1147 = vmatpush3.bf16.msra.mxu1 %v1144_v10 }
 0x1ce   :  { %1149 = vmatprep.subr.bf16.mxu1 %v1148_v15 }
 0x1d1   :  { %1151 = vmatpush3.bf16.msra.mxu1 %v1148_v15 }
 0x1d2   :  { %1153 = vmatprep.subr.bf16.mxu1 %v1152_v19 }
 0x1d4   :  { %1045 = vmatmul.mubr.bf16.gmra.mrb[4].mxu1 %v1485_v29 }
 0x1d5   :  { %1048 = vmatprep.mubr.bf16.mxu1 %v1487_v30  ;;  %1155 = vmatpush3.bf16.msra.mxu1 %v1152_v19 }
 0x1d6   :  { %1157 = vmatprep.subr.bf16.mxu1 %v1156_v26 }
 0x1d9   :  { %1159 = vmatpush3.bf16.msra.mxu1 %v1156_v26 }
 0x1da   :  { %1161 = vmatprep.subr.bf16.mxu1 %v1160_v48 }
 0x1dc   :  { %1049 = vmatmul.mubr.bf16.gmra.mrb[8].mxu1 %v1491_v31 }
 0x1dd   :  { %1052 = vmatprep.mubr.bf16.mxu1 %v1493_v32  ;;  %1163 = vmatpush3.bf16.msra.mxu1 %v1160_v48 }
 0x1de   :  { %1165 = vmatprep.subr.bf16.mxu1 %v1164_v54 }
 0x1e1   :  { %1167 = vmatpush3.bf16.msra.mxu1 %v1164_v54 }
 0x1e2   :  { %1169 = vmatprep.subr.bf16.mxu1 %v1168_v61 }
 0x1e4   :  { %1053 = vmatmul.mubr.bf16.gmra.mrb[12].mxu1 %v1497_v33 }
 0x1e5   :  { %1171 = vmatpush3.bf16.msra.mxu1 %v1168_v61 }
 0x29f   :  { %v1042_v62 = vpop.f32.mrb[0].mxu1 }
 0x2a0   :  { %v501_v1 = vpop.f32.mrb[1].mxu1  ;;  %v566_v3 = vmul.f32 %v1042_v62, %v1507_v39 }
 0x2a1   :  { %v1043_v2 = vpop.f32.mrb[2].mxu1  ;;  %v564_v8 = vmul.f32 %v501_v1, %v1503_v37 }
 0x2a2   :  { %v567_v4 = vmul.f32 %v1043_v2, %v1505_v38  ;;  %v504_v5 = vpop.f32.mrb[3].mxu1 }
 0x2a3   :  { %v565_v10 = vmul.f32 %v504_v5, %v1501_v36 }
 0x2a4   :  { %v581_v12 = vpack.c.bf16 %v567_v4, %v566_v3 }
 0x2a5   :  { %v580_v15 = vpack.c.bf16 %v565_v10, %v564_v8 }
 0x2a7   :  { %v1046_v16 = vpop.f32.mrb[4].mxu1  ;;  %1056 = vmatprep.subr.bf16.mxu0 %v580_v15 }
 0x2a8   :  { %v517_v17 = vpop.f32.mrb[5].mxu1  ;;  %1057 = vmatpush3.bf16.msra.mxu0 %v580_v15  ;;  %v570_v22 = vmul.f32 %v1046_v16, %v1515_v47 }
 0x2a9   :  { %v1047_v19 = vpop.f32.mrb[6].mxu1  ;;  %1058 = vmatprep.subr.bf16.mxu0 %v581_v12  ;;  %v568_v38 = vmul.f32 %v517_v17, %v1511_v43 }
 0x2aa   :  { %v571_v24 = vmul.f32 %v1047_v19, %v1513_v45  ;;  %v520_v39 = vpop.f32.mrb[7].mxu1 }
 0x2ab   :  { %v569_v26 = vmul.f32 %v520_v39, %v1509_v42 }
 0x2ac   :  { %v583_v37 = vpack.c.bf16 %v571_v24, %v570_v22  ;;  %1059 = vmatpush3.bf16.msra.mxu0 %v581_v12 }
 0x2ad   :  { %v582_v36 = vpack.c.bf16 %v569_v26, %v568_v38 }
 0x2af   :  { %v1050_v44 = vpop.f32.mrb[8].mxu1  ;;  %1060 = vmatprep.subr.bf16.mxu0 %v582_v36 }
 0x2b0   :  { %v533_v46 = vpop.f32.mrb[9].mxu1  ;;  %1061 = vmatpush3.bf16.msra.mxu0 %v582_v36  ;;  %v574_v23 = vmul.f32 %v1050_v44, %v1531_v11 }
 0x2b1   :  { %v1051_v48 = vpop.f32.mrb[10].mxu1  ;;  %1062 = vmatprep.subr.bf16.mxu0 %v583_v37  ;;  %v572_v45 = vmul.f32 %v533_v46, %v1523_v60 }
 0x2b2   :  { %v575_v47 = vmul.f32 %v1051_v48, %v1529_v9  ;;  %v536_v52 = vpop.f32.mrb[11].mxu1 }
 0x2b3   :  { %v573_v43 = vmul.f32 %v536_v52, %v1521_v59 }
 0x2b4   :  { %v585_v54 = vpack.c.bf16 %v575_v47, %v574_v23  ;;  %1063 = vmatpush3.bf16.msra.mxu0 %v583_v37 }
 0x2b5   :  { %v584_v42 = vpack.c.bf16 %v573_v43, %v572_v45 }
 0x2b7   :  { %v1054_v55 = vpop.f32.mrb[12].mxu1  ;;  %1064 = vmatprep.subr.bf16.mxu0 %v584_v42 }
 0x2b8   :  { %v549_v58 = vpop.f32.mrb[13].mxu1  ;;  %1065 = vmatpush3.bf16.msra.mxu0 %v584_v42  ;;  %v578_v62 = vmul.f32 %v1054_v55, %v1543_v53 }
 0x2b9   :  { %v1055_v61 = vpop.f32.mrb[14].mxu1  ;;  %1066 = vmatprep.subr.bf16.mxu0 %v585_v54  ;;  %v576_v9 = vmul.f32 %v549_v58, %v1537_v25  ;;  %v716_v25 = vld [vmem:[#allocation5 + $0x78] sm:$0xff] }
 0x2ba   :  { %v579_v11 = vmul.f32 %v1055_v61, %v1541_v51  ;;  %v552_v1 = vpop.f32.mrb[15].mxu1 }
 0x2bb   :  { %v577_v60 = vmul.f32 %v552_v1, %v1533_v18  ;;  %v715_v18 = vld [vmem:[#allocation5 + $0x70] sm:$0xff] }
 0x2bc   :  { %v587_v2 = vpack.c.bf16 %v579_v11, %v578_v62  ;;  %1067 = vmatpush3.bf16.msra.mxu0 %v585_v54  ;;  %v1172_v51 = vpack.c.bf16 %v716_v25, %v715_v18 }
 0x2bd   :  { %v586_v59 = vpack.c.bf16 %v577_v60, %v576_v9 }
 0x2be   :  { %1173 = vmatprep.subr.bf16.mxu1 %v1172_v51 }
 0x2bf   :  { %1068 = vmatprep.subr.bf16.mxu0 %v586_v59  ;;  %1175 = vmatpush3.bf16.msra.mxu1 %v1172_v51 }
 0x2c0   :  { %1069 = vmatpush3.bf16.msra.mxu0 %v586_v59 }
 0x2c1   :  { %1070 = vmatprep.subr.bf16.mxu0 %v587_v2 }
 0x2c4   :  { %1071 = vmatpush3.bf16.msra.mxu0 %v587_v2 }
 0x2c7   :  { %1073 = vmatmul.mubr.bf16.vlgmr.msra.gmra.mrb[16].mxu0 %v1479_v27 }
 0x2c8   :  { %1076 = vmatprep.mubr.bf16.mxu0 %v1481_v28 }
 0x2cf   :  { %1077 = vmatmul.mubr.bf16.gmra.mrb[20].mxu0 %v1485_v29 }
 0x2d0   :  { %1080 = vmatprep.mubr.bf16.mxu0 %v1487_v30 }
 0x2d7   :  { %1081 = vmatmul.mubr.bf16.gmra.mrb[24].mxu0 %v1491_v31 }
 0x2d8   :  { %1084 = vmatprep.mubr.bf16.mxu0 %v1493_v32 }
 0x2df   :  { %1085 = vmatmul.mubr.bf16.gmra.mrb[28].mxu0 %v1497_v33 }
 0x39a   :  { %v1074_v53 = vpop.f32.mrb[16].mxu0 }
 0x39b   :  { %v622_v3 = vpop.f32.mrb[17].mxu0  ;;  %v687_v30 = vmul.f32 %v1074_v53, %v1383_v34 }
 0x39c   :  { %v685_v27 = vmul.f32 %v622_v3, %v1385_v35  ;;  %v1075_v28 = vpop.f32.mrb[18].mxu0 }
 0x39d   :  { %v625_v4 = vpop.f32.mrb[19].mxu0  ;;  %v688_v31 = vmul.f32 %v1075_v28, %v1399_v40 }
 0x39e   :  { %v686_v29 = vmul.f32 %v625_v4, %v1401_v41  ;;  %1120 = vmatprep.mubr.f32.mxu1 %v685_v27 }
 0x3a0   :  { %1121 = vmatmul.mubr.f32.vlgmr.msra.gmra.mrb[16].mxu1 %v686_v29 }
 0x3a1   :  { %1123 = vmatprep.mubr.f32.mxu1 %v687_v30 }
 0x3a2   :  { %v1078_v32 = vpop.f32.mrb[20].mxu0 }
 0x3a3   :  { %v638_v33 = vpop.f32.mrb[21].mxu0  ;;  %v691_v12 = vmul.f32 %v1078_v32, %v1427_v57 }
 0x3a4   :  { %v689_v5 = vmul.f32 %v638_v33, %v1415_v50  ;;  %v1079_v8 = vpop.f32.mrb[22].mxu0  ;;  %1124 = vmatmul.mubr.f32.gmra.mrb[18].mxu1 %v688_v31 }
 0x3a5   :  { %v641_v10 = vpop.f32.mrb[23].mxu0  ;;  %v692_v34 = vmul.f32 %v1079_v8, %v1425_v56 }
 0x3a6   :  { %v690_v35 = vmul.f32 %v641_v10, %v1413_v49  ;;  %1126 = vmatprep.mubr.f32.mxu1 %v689_v5 }
 0x3a8   :  { %1127 = vmatmul.mubr.f32.gmra.mrb[20].mxu1 %v690_v35 }
 0x3a9   :  { %1129 = vmatprep.mubr.f32.mxu1 %v691_v12 }
 0x3aa   :  { %v1082_v41 = vpop.f32.mrb[24].mxu0 }
 0x3ab   :  { %v654_v15 = vpop.f32.mrb[25].mxu0  ;;  %v695_v19 = vmul.f32 %v1082_v41, %v1451_v7 }
 0x3ac   :  { %v693_v40 = vmul.f32 %v654_v15, %v1439_v0  ;;  %v1083_v16 = vpop.f32.mrb[26].mxu0  ;;  %1130 = vmatmul.mubr.f32.gmra.mrb[22].mxu1 %v692_v34 }
 0x3ad   :  { %v657_v17 = vpop.f32.mrb[27].mxu0  ;;  %v696_v49 = vmul.f32 %v1083_v16, %v1449_v6  ;;  %v911_v6 = vld [vmem:[%s1617_s4] ss:$0 sm:$0xff]  ;;  %s1273_s4 = smov [#allocation7]  }
 0x3ae   :  { %v694_v50 = vmul.f32 %v657_v17, %v1437_v63  ;;  %1132 = vmatprep.mubr.f32.mxu1 %v693_v40  ;;  %s890_s7 = sshll.u32 %s1273_s4, 4  ;;  %s891_s7 = int_to_ptr.vmem [resolvable:$true] %s890_s7 }
 0x3af   :  { %s1238_s8 = scalar_lea.vmem %s891_s7, 2048  ;;  %p1243_p3 = scmp.lt.s32.totalorder %s891_s7, %s891_s7 }
 0x3b0   :  { %1133 = vmatmul.mubr.f32.gmra.mrb[24].mxu1 %v694_v50  ;;  %p1239_p2 = scmp.ne.s32.totalorder %s891_s7, %s1238_s8  ;;  %p1244_p4 = scmp.lt.s32.totalorder %s1238_s8, %s1238_s8 }
 0x3b1   :  { %1135 = vmatprep.mubr.f32.mxu1 %v695_v19 }
 0x3b2   :  { %v1086_v57 = vpop.f32.mrb[28].mxu0  ;;  %p1245_p5 = por %p1244_p4, %p1243_p3 }
 0x3b3   :  { %v670_v22 = vpop.f32.mrb[29].mxu0  ;;  %v699_v38 = vmul.f32 %v1086_v57, %v1475_v21 }
 0x3b4   :  { %v697_v56 = vmul.f32 %v670_v22, %v1463_v14  ;;  %v1087_v24 = vpop.f32.mrb[30].mxu0  ;;  %1136 = vmatmul.mubr.f32.gmra.mrb[26].mxu1 %v696_v49  ;;  %p1246_p6 = pnand %p1245_p5, %p1239_p2 }
 0x3b5   :  { %v673_v39 = vpop.f32.mrb[31].mxu0  ;;  %v700_v63 = vmul.f32 %v1087_v24, %v1473_v20 }
 0x3b6   :  { %v698_v0 = vmul.f32 %v673_v39, %v1461_v13  ;;  %1138 = vmatprep.mubr.f32.mxu1 %v697_v56 }
 0x3b8   :  { %1139 = vmatmul.mubr.f32.gmra.mrb[28].mxu1 %v698_v0 }
 0x3b9   :  { %1141 = vmatprep.mubr.f32.mxu1 %v699_v38 }
 0x3bc   :  { %1142 = vmatmul.mubr.f32.gmra.mrb[30].mxu1 %v700_v63 }
 0x473   :  { %v1122_v7 = vpop.f32.mrb[16].mxu1 }
 0x474   :  { %v796_v26 = vadd.f32 %v1122_v7, %v911_v6  ;;  %v790_v14 = vpop.f32.mrb[17].mxu1 }
 0x475   :  { %v791_v37 = vadd.f32 %v911_v6, %v790_v14 }
 0x476   :  { %870 = vst [vmem:[#allocation7 + $0x8] sm:$0xff] %v796_v26 }
 0x477   :  { %869 = vst [vmem:[#allocation7] sm:$0xff] %v791_v37  ;;  %v1125_v36 = vpop.f32.mrb[18].mxu1 }
 0x478   :  { %v806_v13 = vadd.f32 %v1125_v36, %v911_v6  ;;  %v800_v44 = vpop.f32.mrb[19].mxu1 }
 0x479   :  { %v801_v46 = vadd.f32 %v911_v6, %v800_v44 }
 0x47a   :  { %872 = vst [vmem:[#allocation7 + $0x18] sm:$0xff] %v806_v13 }
 0x47b   :  { %871 = vst [vmem:[#allocation7 + $0x10] sm:$0xff] %v801_v46  ;;  %v1128_v21 = vpop.f32.mrb[20].mxu1 }
 0x47c   :  { %v816_v48 = vadd.f32 %v1128_v21, %v911_v6  ;;  %v810_v20 = vpop.f32.mrb[21].mxu1 }
 0x47d   :  { %v811_v23 = vadd.f32 %v911_v6, %v810_v20 }
 0x47e   :  { %874 = vst [vmem:[#allocation7 + $0x28] sm:$0xff] %v816_v48 }
 0x47f   :  { %873 = vst [vmem:[#allocation7 + $0x20] sm:$0xff] %v811_v23  ;;  %v1131_v47 = vpop.f32.mrb[22].mxu1 }
 0x480   :  { %v826_v52 = vadd.f32 %v1131_v47, %v911_v6  ;;  %v820_v45 = vpop.f32.mrb[23].mxu1 }
 0x481   :  { %v821_v43 = vadd.f32 %v911_v6, %v820_v45 }
 0x482   :  { %876 = vst [vmem:[#allocation7 + $0x38] sm:$0xff] %v826_v52 }
 0x483   :  { %875 = vst [vmem:[#allocation7 + $0x30] sm:$0xff] %v821_v43  ;;  %v1134_v54 = vpop.f32.mrb[24].mxu1 }
 0x484   :  { %v836_v42 = vadd.f32 %v1134_v54, %v911_v6  ;;  %v830_v55 = vpop.f32.mrb[25].mxu1 }
 0x485   :  { %v831_v58 = vadd.f32 %v911_v6, %v830_v55 }
 0x486   :  { %878 = vst [vmem:[#allocation7 + $0x48] sm:$0xff] %v836_v42 }
 0x487   :  { %877 = vst [vmem:[#allocation7 + $0x40] sm:$0xff] %v831_v58  ;;  %v1137_v61 = vpop.f32.mrb[26].mxu1 }
 0x488   :  { %v846_v62 = vadd.f32 %v1137_v61, %v911_v6  ;;  %v840_v11 = vpop.f32.mrb[27].mxu1 }
 0x489   :  { %v841_v1 = vadd.f32 %v911_v6, %v840_v11 }
 0x48a   :  { %880 = vst [vmem:[#allocation7 + $0x58] sm:$0xff] %v846_v62 }
 0x48b   :  { %879 = vst [vmem:[#allocation7 + $0x50] sm:$0xff] %v841_v1  ;;  %v1140_v9 = vpop.f32.mrb[28].mxu1 }
 0x48c   :  { %v856_v60 = vadd.f32 %v1140_v9, %v911_v6  ;;  %v850_v2 = vpop.f32.mrb[29].mxu1 }
 0x48d   :  { %v851_v59 = vadd.f32 %v911_v6, %v850_v2 }
 0x48e   :  { %882 = vst [vmem:[#allocation7 + $0x68] sm:$0xff] %v856_v60 }
 0x48f   :  { %881 = vst [vmem:[#allocation7 + $0x60] sm:$0xff] %v851_v59  ;;  %v1143_v18 = vpop.f32.mrb[30].mxu1 }
 0x490   :  { %v866_v25 = vadd.f32 %v1143_v18, %v911_v6  ;;  %v860_v51 = vpop.f32.mrb[31].mxu1 }
 0x491   :  { %v861_v53 = vadd.f32 %v911_v6, %v860_v51 }
 0x492   :  { %884 = vst [vmem:[#allocation7 + $0x78] sm:$0xff] %v866_v25 }
 0x493   :  { %883 = vst [vmem:[#allocation7 + $0x70] sm:$0xff] %v861_v53 }
 0x494   :  { %1249 = shalt.err (!%p1246_p6)
}
 0x495   :  { %s1250_s11 = scalar_lea.hbm %s1618_s5, 2048 }
 0x496   :  { %p1251_p7 = scmp.ne.s32.totalorder %s1618_s5, %s1250_s11  ;;  %p1254_p8 = scmp.lt.u32.totalorder %s1250_s11, %s1618_s5 }
 0x498   :  { %p1256_p9 = pnand %p1254_p8, %p1251_p7 }
 0x49a   :  { %1259 = shalt.err (!%p1256_p9)
}
 0x49b   :  { %896 = dma.vmem_to_hbm [thread:$0]  %s891_s7, 2048, %s1618_s5, [#allocation4], %s1270_s0, %s1270_s0, %s1271_s17  }
 0x49c   :  { %1264 = dma.done.wait [#allocation4], 2048  }
 0x49d   :  { %1265 = vsyncadd [#allocation4], 4294965248 }
 0x49e   :  { %900 = vsyncpa [#allocation3], 1 }
 0x49f   :  { %901 = vsyncpa [#allocation6], 1 }
 0x4a0   :  { %902 = vsyncpa [#allocation4], 1 }

// kernel: tpu_custom_call.1
= control target key start
LH: loop header
LB: loop body
LE: loop exit
PB: predicated region body
PF: predicated region fallthrough
CT: control target
= control target key end

     0   :  { %10 = vsyncpa [#allocation3], 0  ;;  %s1613_s0 = inlined_call_operand.hbm [shape: bf16[128,128], index: 0, kind: input, shape index: {}]   ;;  %s1614_s1 = inlined_call_operand.vmem [shape: f32[128,128], index: 1, kind: input, shape index: {}]   ;;  %s1615_s2 = inlined_call_operand.vmem [shape: f32[128,1], index: 2, kind: input, shape index: {}]   ;;  %s1616_s3 = inlined_call_operand.hbm [shape: f32[128,128], index: 3, kind: input, shape index: {}]   ;;  %s1617_s4 = inlined_call_operand.vmem [shape: f32[1,128], index: 4, kind: input, shape index: {}]   ;;  %s1618_s5 = inlined_call_operand.hbm [shape: f32[128,128], index: 5, kind: output, shape index: {}]  }
   0x1   :  { %11 = vsyncpa [#allocation6], 0 }
   0x2   :  { %12 = vsyncpa [#allocation4], 0  ;;  %s1266_s18 = smov [#allocation2]   ;;  %s1194_s22 = scalar_lea.hbm %s1613_s0, 1024 }
   0x3   :  { %s18_s19 = sshll.u32 %s1266_s18, 4  ;;  %p1195_p0 = scmp.ne.s32.totalorder %s1613_s0, %s1194_s22  ;;  %s19_s19 = int_to_ptr.vmem [resolvable:$true] %s18_s19 }
   0x4   :  { %p1198_p1 = scmp.lt.u32.totalorder %s1194_s22, %s1613_s0 }
   0x6   :  { %p1200_p2 = pnand %p1198_p1, %p1195_p0 }
   0x8   :  { %1203 = shalt.err (!%p1200_p2)
}
   0x9   :  { %s1204_s27 = scalar_lea.vmem %s19_s19, 1024  ;;  %p1209_p4 = scmp.lt.s32.totalorder %s19_s19, %s19_s19 }
   0xa   :  { %p1205_p3 = scmp.ne.s32.totalorder %s19_s19, %s1204_s27  ;;  %p1210_p5 = scmp.lt.s32.totalorder %s1204_s27, %s1204_s27 }
   0xc   :  { %p1211_p6 = por %p1210_p5, %p1209_p4 }
   0xe   :  { %p1212_p7 = pnand %p1211_p6, %p1205_p3 }
  0x10   :  { %1215 = shalt.err (!%p1212_p7)
}
  0x11   :  { %s1267_s28 = smov 64   ;;  %s1268_s29 = smov 4  }
  0x12   :  { %24 = dma.hbm_to_vmem [thread:$0]  %s1613_s0, 1024, %s19_s19, [#allocation3], %s1267_s28, %s1267_s28, %s1268_s29  }
  0x13   :  { %s1269_s7 = smov [#allocation5]   ;;  %s1216_s11 = scalar_lea.hbm %s1616_s3, 2048 }
  0x14   :  { %s34_s8 = sshll.u32 %s1269_s7, 4  ;;  %p1217_p8 = scmp.ne.s32.totalorder %s1616_s3, %s1216_s11  ;;  %s35_s8 = int_to_ptr.vmem [resolvable:$true] %s34_s8 }
  0x15   :  { %p1220_p9 = scmp.lt.u32.totalorder %s1216_s11, %s1616_s3 }
  0x17   :  { %p1222_p10 = pnand %p1220_p9, %p1217_p8 }
  0x19   :  { %1225 = shalt.err (!%p1222_p10)
}
  0x1a   :  { %s1226_s16 = scalar_lea.vmem %s35_s8, 2048  ;;  %p1231_p12 = scmp.lt.s32.totalorder %s35_s8, %s35_s8 }
  0x1b   :  { %p1227_p11 = scmp.ne.s32.totalorder %s35_s8, %s1226_s16  ;;  %p1232_p13 = scmp.lt.s32.totalorder %s1226_s16, %s1226_s16 }
  0x1d   :  { %p1233_p0 = por %p1232_p13, %p1231_p12 }
  0x1f   :  { %p1234_p1 = pnand %p1233_p0, %p1227_p11 }
  0x21   :  { %1237 = shalt.err (!%p1234_p1)
}
  0x22   :  { %s1270_s0 = smov 128   ;;  %s1271_s17 = smov 8  }
  0x23   :  { %40 = dma.hbm_to_vmem [thread:$0]  %s1616_s3, 2048, %s35_s8, [#allocation6], %s1270_s0, %s1270_s0, %s1271_s17  }
  0x24   :  { %1260 = dma.done.wait [#allocation3], 1024  }
  0x25   :  { %1261 = vsyncadd [#allocation3], 4294966272 }
  0x26   :  { %1262 = dma.done.wait [#allocation6], 2048  }
  0x27   :  { %1263 = vsyncadd [#allocation6], 4294965248  ;;  %v1272_v0 = vmov 0   ;;  %v68_v1 = vld [vmem:[%s1615_s2 + $0x10] sm:$0xff]  ;;  %v66_v2 = vld [vmem:[%s1615_s2] sm:$0xff] }
  0x28   :  { %1185 = vset.pattern.permute.xlu1 %v1272_v0  ;;  %1184 = vset.pattern.permute.xlu0 %v1272_v0  ;;  %v69_v3 = vld [vmem:[%s1615_s2 + $0x18] sm:$0xff]  ;;  %v67_v4 = vld [vmem:[%s1615_s2 + $0x8] sm:$0xff]  ;;  %v70_v6 = vld [vmem:[%s1615_s2 + $0x20] sm:$0xff]  ;;  %v82_v17 = vmul.f32 %v66_v2, %v66_v2  ;;  %v84_v19 = vmul.f32 %v68_v1, %v68_v1 }
  0x29   :  { %126 = vperm.xlu1 %1185, %v68_v1   ;;  %116 = vperm.xlu0 %1184, %v66_v2   ;;  %v71_v5 = vld [vmem:[%s1615_s2 + $0x28] sm:$0xff]  ;;  %v73_v7 = vld [vmem:[%s1615_s2 + $0x38] sm:$0xff]  ;;  %v72_v8 = vld [vmem:[%s1615_s2 + $0x30] sm:$0xff]  ;;  %v83_v18 = vmul.f32 %v67_v4, %v67_v4  ;;  %v85_v20 = vmul.f32 %v69_v3, %v69_v3  ;;  %v86_v22 = vmul.f32 %v70_v6, %v70_v6 }
  0x2a   :  { %v75_v9 = vld [vmem:[%s1615_s2 + $0x48] sm:$0xff]  ;;  %v74_v10 = vld [vmem:[%s1615_s2 + $0x40] sm:$0xff]  ;;  %v77_v11 = vld [vmem:[%s1615_s2 + $0x58] sm:$0xff]  ;;  %v87_v21 = vmul.f32 %v71_v5, %v71_v5  ;;  %v89_v24 = vmul.f32 %v73_v7, %v73_v7  ;;  %v88_v25 = vmul.f32 %v72_v8, %v72_v8 }
  0x2b   :  { %v76_v12 = vld [vmem:[%s1615_s2 + $0x50] sm:$0xff]  ;;  %v79_v13 = vld [vmem:[%s1615_s2 + $0x68] sm:$0xff]  ;;  %v78_v14 = vld [vmem:[%s1615_s2 + $0x60] sm:$0xff]  ;;  %v91_v26 = vmul.f32 %v75_v9, %v75_v9  ;;  %v90_v27 = vmul.f32 %v74_v10, %v74_v10  ;;  %v93_v28 = vmul.f32 %v77_v11, %v77_v11 }
  0x2c   :  { %v81_v15 = vld [vmem:[%s1615_s2 + $0x78] sm:$0xff]  ;;  %v80_v16 = vld [vmem:[%s1615_s2 + $0x70] sm:$0xff]  ;;  %v1379_v23 = vld [vmem:[#allocation2] sm:$0xff]   ;;  %v92_v29 = vmul.f32 %v76_v12, %v76_v12  ;;  %v95_v30 = vmul.f32 %v79_v13, %v79_v13  ;;  %v94_v31 = vmul.f32 %v78_v14, %v78_v14 }
  0x2d   :  { %131 = vperm.xlu1 %1185, %v69_v3   ;;  %121 = vperm.xlu0 %1184, %v67_v4   ;;  %v97_v32 = vmul.f32 %v81_v15, %v81_v15  ;;  %v96_v33 = vmul.f32 %v80_v16, %v80_v16  ;;  %v100_v36 = vld [vmem:[%s1614_s1 + $0x10] sm:$0xff]  ;;  %v98_v37 = vld [vmem:[%s1614_s1] sm:$0xff]  ;;  %v101_v38 = vld [vmem:[%s1614_s1 + $0x18] sm:$0xff] }
  0x2e   :  { %1008 = vmatprep.mubr.bf16.mxu0 %v1379_v23  ;;  %1040 = vmatprep.mubr.bf16.mxu1 %v1379_v23  ;;  %v99_v39 = vld [vmem:[%s1614_s1 + $0x8] sm:$0xff]  ;;  %v102_v47 = vld [vmem:[%s1614_s1 + $0x20] sm:$0xff]  ;;  %v105_v54 = vld [vmem:[%s1614_s1 + $0x38] sm:$0xff] }
  0x2f   :  { %v103_v46 = vld [vmem:[%s1614_s1 + $0x28] sm:$0xff]  ;;  %v104_v55 = vld [vmem:[%s1614_s1 + $0x30] sm:$0xff]  ;;  %v106_v62 = vld [vmem:[%s1614_s1 + $0x40] sm:$0xff] }
  0x30   :  { %v107_v61 = vld [vmem:[%s1614_s1 + $0x48] sm:$0xff]  ;;  %v109_v4 = vld [vmem:[%s1614_s1 + $0x58] sm:$0xff] }
  0x31   :  { %141 = vperm.xlu1 %1185, %v71_v5   ;;  %136 = vperm.xlu0 %1184, %v70_v6   ;;  %v108_v5 = vld [vmem:[%s1614_s1 + $0x50] sm:$0xff] }
  0x35   :  { %151 = vperm.xlu1 %1185, %v73_v7   ;;  %146 = vperm.xlu0 %1184, %v72_v8  }
  0x39   :  { %161 = vperm.xlu1 %1185, %v75_v9   ;;  %156 = vperm.xlu0 %1184, %v74_v10  }
  0x3d   :  { %171 = vperm.xlu1 %1185, %v77_v11   ;;  %166 = vperm.xlu0 %1184, %v76_v12   ;;  %v111_v11 = vld [vmem:[%s1614_s1 + $0x68] sm:$0xff]  ;;  %v110_v12 = vld [vmem:[%s1614_s1 + $0x60] sm:$0xff] }
  0x41   :  { %181 = vperm.xlu1 %1185, %v79_v13   ;;  %176 = vperm.xlu0 %1184, %v78_v14  }
  0x45   :  { %191 = vperm.xlu1 %1185, %v81_v15   ;;  %186 = vperm.xlu0 %1184, %v80_v16  }
  0x49   :  { %370 = vperm.xlu1 %1185, %v83_v18   ;;  %365 = vperm.xlu0 %1184, %v82_v17   ;;  %v113_v18 = vld [vmem:[%s1614_s1 + $0x78] sm:$0xff] }
  0x4d   :  { %380 = vperm.xlu1 %1185, %v85_v20   ;;  %375 = vperm.xlu0 %1184, %v84_v19   ;;  %v112_v19 = vld [vmem:[%s1614_s1 + $0x70] sm:$0xff] }
  0x51   :  { %390 = vperm.xlu1 %1185, %v87_v21   ;;  %385 = vperm.xlu0 %1184, %v86_v22  }
  0x55   :  { %400 = vperm.xlu1 %1185, %v89_v24   ;;  %395 = vperm.xlu0 %1184, %v88_v25  }
  0x59   :  { %410 = vperm.xlu1 %1185, %v91_v26   ;;  %405 = vperm.xlu0 %1184, %v90_v27   ;;  %v1479_v27 = vld [vmem:[#allocation2 + $0x8] sm:$0xff]  }
  0x5d   :  { %420 = vperm.xlu1 %1185, %v93_v28   ;;  %415 = vperm.xlu0 %1184, %v92_v29   ;;  %v1481_v28 = vld [vmem:[#allocation2 + $0x10] sm:$0xff]   ;;  %v1485_v29 = vld [vmem:[#allocation2 + $0x18] sm:$0xff]  }
  0x61   :  { %430 = vperm.xlu1 %1185, %v95_v30   ;;  %425 = vperm.xlu0 %1184, %v94_v31   ;;  %v1487_v30 = vld [vmem:[#allocation2 + $0x20] sm:$0xff]   ;;  %v1491_v31 = vld [vmem:[#allocation2 + $0x28] sm:$0xff]  }
  0x65   :  { %440 = vperm.xlu1 %1185, %v97_v32   ;;  %435 = vperm.xlu0 %1184, %v96_v33   ;;  %v1493_v32 = vld [vmem:[#allocation2 + $0x30] sm:$0xff]   ;;  %v1497_v33 = vld [vmem:[#allocation2 + $0x38] sm:$0xff]  }
  0xa8   :  { %v1383_v34 = vpop.permute.xlu1 %126  ;;  %v1385_v35 = vpop.permute.xlu0 %116 }
  0xa9   :  { %v196_v42 = vmul.f32 %v1383_v34, %v100_v36  ;;  %v194_v43 = vmul.f32 %v1385_v35, %v98_v37 }
  0xac   :  { %v1399_v40 = vpop.permute.xlu1 %131  ;;  %v1401_v41 = vpop.permute.xlu0 %121 }
  0xad   :  { %v197_v44 = vmul.f32 %v1399_v40, %v101_v38  ;;  %v195_v45 = vmul.f32 %v1401_v41, %v99_v39 }
  0xaf   :  { %v210_v48 = vpack.c.bf16 %v195_v45, %v194_v43  ;;  %v211_v51 = vpack.c.bf16 %v197_v44, %v196_v42 }
  0xb0   :  { %v1413_v49 = vpop.permute.xlu1 %141  ;;  %v1415_v50 = vpop.permute.xlu0 %136 }
  0xb1   :  { %v199_v52 = vmul.f32 %v1413_v49, %v103_v46  ;;  %v198_v53 = vmul.f32 %v1415_v50, %v102_v47  ;;  %992 = vmatprep.subr.bf16.mxu0 %v210_v48 }
  0xb2   :  { %993 = vmatpush3.bf16.msra.mxu0 %v210_v48 }
  0xb3   :  { %994 = vmatprep.subr.bf16.mxu0 %v211_v51  ;;  %v212_v58 = vpack.c.bf16 %v199_v52, %v198_v53 }
  0xb4   :  { %v1425_v56 = vpop.permute.xlu1 %151  ;;  %v1427_v57 = vpop.permute.xlu0 %146 }
  0xb5   :  { %v201_v59 = vmul.f32 %v1425_v56, %v105_v54  ;;  %v200_v60 = vmul.f32 %v1427_v57, %v104_v55 }
  0xb6   :  { %995 = vmatpush3.bf16.msra.mxu0 %v211_v51 }
  0xb7   :  { %996 = vmatprep.subr.bf16.mxu0 %v212_v58  ;;  %v213_v1 = vpack.c.bf16 %v201_v59, %v200_v60 }
  0xb8   :  { %v1437_v63 = vpop.permute.xlu1 %161  ;;  %v1439_v0 = vpop.permute.xlu0 %156 }
  0xb9   :  { %v203_v2 = vmul.f32 %v1437_v63, %v107_v61  ;;  %v202_v3 = vmul.f32 %v1439_v0, %v106_v62 }
  0xba   :  { %997 = vmatpush3.bf16.msra.mxu0 %v212_v58 }
  0xbb   :  { %998 = vmatprep.subr.bf16.mxu0 %v213_v1  ;;  %v214_v8 = vpack.c.bf16 %v203_v2, %v202_v3 }
  0xbc   :  { %v1449_v6 = vpop.permute.xlu1 %171  ;;  %v1451_v7 = vpop.permute.xlu0 %166 }
  0xbd   :  { %v205_v9 = vmul.f32 %v1449_v6, %v109_v4  ;;  %v204_v10 = vmul.f32 %v1451_v7, %v108_v5 }
  0xbe   :  { %999 = vmatpush3.bf16.msra.mxu0 %v213_v1 }
  0xbf   :  { %1000 = vmatprep.subr.bf16.mxu0 %v214_v8  ;;  %v215_v15 = vpack.c.bf16 %v205_v9, %v204_v10 }
  0xc0   :  { %v1461_v13 = vpop.permute.xlu1 %181  ;;  %v1463_v14 = vpop.permute.xlu0 %176 }
  0xc1   :  { %v207_v16 = vmul.f32 %v1461_v13, %v111_v11  ;;  %v206_v17 = vmul.f32 %v1463_v14, %v110_v12 }
  0xc2   :  { %1001 = vmatpush3.bf16.msra.mxu0 %v214_v8 }
  0xc3   :  { %1002 = vmatprep.subr.bf16.mxu0 %v215_v15  ;;  %v216_v22 = vpack.c.bf16 %v207_v16, %v206_v17 }
  0xc4   :  { %v1473_v20 = vpop.permute.xlu1 %191  ;;  %v1475_v21 = vpop.permute.xlu0 %186 }
  0xc5   :  { %v209_v24 = vmul.f32 %v1473_v20, %v113_v18  ;;  %v208_v25 = vmul.f32 %v1475_v21, %v112_v19 }
  0xc6   :  { %1003 = vmatpush3.bf16.msra.mxu0 %v215_v15 }
  0xc7   :  { %1004 = vmatprep.subr.bf16.mxu0 %v216_v22  ;;  %v217_v26 = vpack.c.bf16 %v209_v24, %v208_v25 }
  0xc8   :  { %v1501_v36 = vpop.permute.xlu1 %370  ;;  %v1503_v37 = vpop.permute.xlu0 %365 }
  0xca   :  { %1005 = vmatpush3.bf16.msra.mxu0 %v216_v22 }
  0xcb   :  { %1006 = vmatprep.subr.bf16.mxu0 %v217_v26 }
  0xcc   :  { %v1505_v38 = vpop.permute.xlu1 %380  ;;  %v1507_v39 = vpop.permute.xlu0 %375 }
  0xce   :  { %1007 = vmatpush3.bf16.msra.mxu0 %v217_v26 }
  0xd0   :  { %v1509_v42 = vpop.permute.xlu1 %390  ;;  %v1511_v43 = vpop.permute.xlu0 %385 }
  0xd1   :  { %1009 = vmatmul.mubr.bf16.vlgmr.msra.gmra.mrb[0].mxu0 %v1479_v27 }
  0xd2   :  { %1012 = vmatprep.mubr.bf16.mxu0 %v1481_v28 }
  0xd4   :  { %v1513_v45 = vpop.permute.xlu1 %400  ;;  %v1515_v47 = vpop.permute.xlu0 %395 }
  0xd8   :  { %v1521_v59 = vpop.permute.xlu1 %410  ;;  %v1523_v60 = vpop.permute.xlu0 %405 }
  0xd9   :  { %1013 = vmatmul.mubr.bf16.gmra.mrb[4].mxu0 %v1485_v29 }
  0xda   :  { %1016 = vmatprep.mubr.bf16.mxu0 %v1487_v30 }
  0xdc   :  { %v1529_v9 = vpop.permute.xlu1 %420  ;;  %v1531_v11 = vpop.permute.xlu0 %415 }
  0xe0   :  { %v1533_v18 = vpop.permute.xlu1 %430  ;;  %v1537_v25 = vpop.permute.xlu0 %425 }
  0xe1   :  { %1017 = vmatmul.mubr.bf16.gmra.mrb[8].mxu0 %v1491_v31 }
  0xe2   :  { %1020 = vmatprep.mubr.bf16.mxu0 %v1493_v32 }
  0xe9   :  { %1021 = vmatmul.mubr.bf16.gmra.mrb[12].mxu0 %v1497_v33 }
  0xea   :  { %1072 = vmatprep.mubr.bf16.mxu0 %v1379_v23 }
 0x1a4   :  { %v1010_v44 = vpop.f32.mrb[0].mxu0 }
 0x1a5   :  { %v300_v46 = vpop.f32.mrb[1].mxu0  ;;  %v445_v23 = vmul.f32 %v1010_v44, %v1507_v39 }
 0x1a6   :  { %v1011_v48 = vpop.f32.mrb[2].mxu0  ;;  %v443_v53 = vmul.f32 %v1503_v37, %v300_v46 }
 0x1a7   :  { %v446_v51 = vmul.f32 %v1011_v48, %v1505_v38  ;;  %v303_v52 = vpop.f32.mrb[3].mxu0 }
 0x1a8   :  { %v444_v54 = vmul.f32 %v1501_v36, %v303_v52 }
 0x1a9   :  { %v460_v55 = vpack.c.bf16 %v446_v51, %v445_v23  ;;  %v1541_v51 = vpop.permute.xlu1 %440 }
 0x1aa   :  { %v459_v58 = vpack.c.bf16 %v444_v54, %v443_v53  ;;  %v1543_v53 = vpop.permute.xlu0 %435 }
 0x1ac   :  { %v1014_v61 = vpop.f32.mrb[4].mxu0  ;;  %1024 = vmatprep.subr.bf16.mxu1 %v459_v58 }
 0x1ad   :  { %v316_v62 = vpop.f32.mrb[5].mxu0  ;;  %1025 = vmatpush3.bf16.msra.mxu1 %v459_v58  ;;  %v449_v2 = vmul.f32 %v1014_v61, %v1515_v47 }
 0x1ae   :  { %v1015_v1 = vpop.f32.mrb[6].mxu0  ;;  %1026 = vmatprep.subr.bf16.mxu1 %v460_v55  ;;  %v447_v5 = vmul.f32 %v1511_v43, %v316_v62 }
 0x1af   :  { %v450_v3 = vmul.f32 %v1015_v1, %v1513_v45  ;;  %v319_v4 = vpop.f32.mrb[7].mxu0 }
 0x1b0   :  { %v448_v8 = vmul.f32 %v1509_v42, %v319_v4  ;;  %v701_v4 = vld [vmem:[#allocation5] sm:$0xff] }
 0x1b1   :  { %v462_v10 = vpack.c.bf16 %v450_v3, %v449_v2  ;;  %1027 = vmatpush3.bf16.msra.mxu1 %v460_v55 }
 0x1b2   :  { %v461_v12 = vpack.c.bf16 %v448_v8, %v447_v5  ;;  %v702_v5 = vld [vmem:[#allocation5 + $0x8] sm:$0xff]  ;;  %v703_v8 = vld [vmem:[#allocation5 + $0x10] sm:$0xff] }
 0x1b4   :  { %v1018_v15 = vpop.f32.mrb[8].mxu0  ;;  %1028 = vmatprep.subr.bf16.mxu1 %v461_v12 }
 0x1b5   :  { %v332_v16 = vpop.f32.mrb[9].mxu0  ;;  %1029 = vmatpush3.bf16.msra.mxu1 %v461_v12  ;;  %v453_v19 = vmul.f32 %v1018_v15, %v1531_v11  ;;  %v704_v12 = vld [vmem:[#allocation5 + $0x18] sm:$0xff] }
 0x1b6   :  { %v1019_v17 = vpop.f32.mrb[10].mxu0  ;;  %1030 = vmatprep.subr.bf16.mxu1 %v462_v10  ;;  %v451_v26 = vmul.f32 %v1523_v60, %v332_v16  ;;  %v1148_v15 = vpack.c.bf16 %v704_v12, %v703_v8  ;;  %v705_v16 = vld [vmem:[#allocation5 + $0x20] sm:$0xff] }
 0x1b7   :  { %v454_v22 = vmul.f32 %v1019_v17, %v1529_v9  ;;  %v335_v24 = vpop.f32.mrb[11].mxu0  ;;  %v706_v17 = vld [vmem:[#allocation5 + $0x28] sm:$0xff] }
 0x1b8   :  { %v452_v44 = vmul.f32 %v1521_v59, %v335_v24  ;;  %v708_v24 = vld [vmem:[#allocation5 + $0x38] sm:$0xff] }
 0x1b9   :  { %v464_v46 = vpack.c.bf16 %v454_v22, %v453_v19  ;;  %1031 = vmatpush3.bf16.msra.mxu1 %v462_v10  ;;  %v1144_v10 = vpack.c.bf16 %v702_v5, %v701_v4  ;;  %v1152_v19 = vpack.c.bf16 %v706_v17, %v705_v16  ;;  %v707_v22 = vld [vmem:[#allocation5 + $0x30] sm:$0xff] }
 0x1ba   :  { %v463_v48 = vpack.c.bf16 %v452_v44, %v451_v26  ;;  %v1156_v26 = vpack.c.bf16 %v708_v24, %v707_v22  ;;  %v709_v44 = vld [vmem:[#allocation5 + $0x40] sm:$0xff] }
 0x1bc   :  { %v1022_v23 = vpop.f32.mrb[12].mxu0  ;;  %1032 = vmatprep.subr.bf16.mxu1 %v463_v48 }
 0x1bd   :  { %v348_v52 = vpop.f32.mrb[13].mxu0  ;;  %1033 = vmatpush3.bf16.msra.mxu1 %v463_v48  ;;  %v457_v55 = vmul.f32 %v1022_v23, %v1543_v53  ;;  %v711_v23 = vld [vmem:[#allocation5 + $0x50] sm:$0xff] }
 0x1be   :  { %v1023_v54 = vpop.f32.mrb[14].mxu0  ;;  %1034 = vmatprep.subr.bf16.mxu1 %v464_v46  ;;  %v455_v62 = vmul.f32 %v1537_v25, %v348_v52  ;;  %v712_v52 = vld [vmem:[#allocation5 + $0x58] sm:$0xff] }
 0x1bf   :  { %v458_v58 = vmul.f32 %v1023_v54, %v1541_v51  ;;  %v351_v61 = vpop.f32.mrb[15].mxu0  ;;  %v1164_v54 = vpack.c.bf16 %v712_v52, %v711_v23 }
 0x1c0   :  { %v456_v1 = vmul.f32 %v1533_v18, %v351_v61 }
 0x1c1   :  { %v466_v2 = vpack.c.bf16 %v458_v58, %v457_v55  ;;  %1035 = vmatpush3.bf16.msra.mxu1 %v464_v46  ;;  %v710_v46 = vld [vmem:[#allocation5 + $0x48] sm:$0xff]  ;;  %v713_v55 = vld [vmem:[#allocation5 + $0x60] sm:$0xff] }
 0x1c2   :  { %v465_v3 = vpack.c.bf16 %v456_v1, %v455_v62  ;;  %v1160_v48 = vpack.c.bf16 %v710_v46, %v709_v44  ;;  %v714_v58 = vld [vmem:[#allocation5 + $0x68] sm:$0xff] }
 0x1c3   :  { %v1168_v61 = vpack.c.bf16 %v714_v58, %v713_v55 }
 0x1c4   :  { %1036 = vmatprep.subr.bf16.mxu1 %v465_v3 }
 0x1c5   :  { %1037 = vmatpush3.bf16.msra.mxu1 %v465_v3 }
 0x1c6   :  { %1038 = vmatprep.subr.bf16.mxu1 %v466_v2 }
 0x1c9   :  { %1039 = vmatpush3.bf16.msra.mxu1 %v466_v2 }
 0x1ca   :  { %1145 = vmatprep.subr.bf16.mxu1 %v1144_v10 }
 0x1cc   :  { %1041 = vmatmul.mubr.bf16.vlgmr.msra.gmra.mrb[0].mxu1 %v1479_v27 }
 0x1cd   :  { %1044 = vmatprep.mubr.bf16.mxu1 %v1481_v28  ;;  %1147 = vmatpush3.bf16.msra.mxu1 %v1144_v10 }
 0x1ce   :  { %1149 = vmatprep.subr.bf16.mxu1 %v1148_v15 }
 0x1d1   :  { %1151 = vmatpush3.bf16.msra.mxu1 %v1148_v15 }
 0x1d2   :  { %1153 = vmatprep.subr.bf16.mxu1 %v1152_v19 }
 0x1d4   :  { %1045 = vmatmul.mubr.bf16.gmra.mrb[4].mxu1 %v1485_v29 }
 0x1d5   :  { %1048 = vmatprep.mubr.bf16.mxu1 %v1487_v30  ;;  %1155 = vmatpush3.bf16.msra.mxu1 %v1152_v19 }
 0x1d6   :  { %1157 = vmatprep.subr.bf16.mxu1 %v1156_v26 }
 0x1d9   :  { %1159 = vmatpush3.bf16.msra.mxu1 %v1156_v26 }
 0x1da   :  { %1161 = vmatprep.subr.bf16.mxu1 %v1160_v48 }
 0x1dc   :  { %1049 = vmatmul.mubr.bf16.gmra.mrb[8].mxu1 %v1491_v31 }
 0x1dd   :  { %1052 = vmatprep.mubr.bf16.mxu1 %v1493_v32  ;;  %1163 = vmatpush3.bf16.msra.mxu1 %v1160_v48 }
 0x1de   :  { %1165 = vmatprep.subr.bf16.mxu1 %v1164_v54 }
 0x1e1   :  { %1167 = vmatpush3.bf16.msra.mxu1 %v1164_v54 }
 0x1e2   :  { %1169 = vmatprep.subr.bf16.mxu1 %v1168_v61 }
 0x1e4   :  { %1053 = vmatmul.mubr.bf16.gmra.mrb[12].mxu1 %v1497_v33 }
 0x1e5   :  { %1171 = vmatpush3.bf16.msra.mxu1 %v1168_v61 }
 0x29f   :  { %v1042_v62 = vpop.f32.mrb[0].mxu1 }
 0x2a0   :  { %v501_v1 = vpop.f32.mrb[1].mxu1  ;;  %v566_v3 = vmul.f32 %v1042_v62, %v1507_v39 }
 0x2a1   :  { %v1043_v2 = vpop.f32.mrb[2].mxu1  ;;  %v564_v8 = vmul.f32 %v501_v1, %v1503_v37 }
 0x2a2   :  { %v567_v4 = vmul.f32 %v1043_v2, %v1505_v38  ;;  %v504_v5 = vpop.f32.mrb[3].mxu1 }
 0x2a3   :  { %v565_v10 = vmul.f32 %v504_v5, %v1501_v36 }
 0x2a4   :  { %v581_v12 = vpack.c.bf16 %v567_v4, %v566_v3 }
 0x2a5   :  { %v580_v15 = vpack.c.bf16 %v565_v10, %v564_v8 }
 0x2a7   :  { %v1046_v16 = vpop.f32.mrb[4].mxu1  ;;  %1056 = vmatprep.subr.bf16.mxu0 %v580_v15 }
 0x2a8   :  { %v517_v17 = vpop.f32.mrb[5].mxu1  ;;  %1057 = vmatpush3.bf16.msra.mxu0 %v580_v15  ;;  %v570_v22 = vmul.f32 %v1046_v16, %v1515_v47 }
 0x2a9   :  { %v1047_v19 = vpop.f32.mrb[6].mxu1  ;;  %1058 = vmatprep.subr.bf16.mxu0 %v581_v12  ;;  %v568_v38 = vmul.f32 %v517_v17, %v1511_v43 }
 0x2aa   :  { %v571_v24 = vmul.f32 %v1047_v19, %v1513_v45  ;;  %v520_v39 = vpop.f32.mrb[7].mxu1 }
 0x2ab   :  { %v569_v26 = vmul.f32 %v520_v39, %v1509_v42 }
 0x2ac   :  { %v583_v37 = vpack.c.bf16 %v571_v24, %v570_v22  ;;  %1059 = vmatpush3.bf16.msra.mxu0 %v581_v12 }
 0x2ad   :  { %v582_v36 = vpack.c.bf16 %v569_v26, %v568_v38 }
 0x2af   :  { %v1050_v44 = vpop.f32.mrb[8].mxu1  ;;  %1060 = vmatprep.subr.bf16.mxu0 %v582_v36 }
 0x2b0   :  { %v533_v46 = vpop.f32.mrb[9].mxu1  ;;  %1061 = vmatpush3.bf16.msra.mxu0 %v582_v36  ;;  %v574_v23 = vmul.f32 %v1050_v44, %v1531_v11 }
 0x2b1   :  { %v1051_v48 = vpop.f32.mrb[10].mxu1  ;;  %1062 = vmatprep.subr.bf16.mxu0 %v583_v37  ;;  %v572_v45 = vmul.f32 %v533_v46, %v1523_v60 }
 0x2b2   :  { %v575_v47 = vmul.f32 %v1051_v48, %v1529_v9  ;;  %v536_v52 = vpop.f32.mrb[11].mxu1 }
 0x2b3   :  { %v573_v43 = vmul.f32 %v536_v52, %v1521_v59 }
 0x2b4   :  { %v585_v54 = vpack.c.bf16 %v575_v47, %v574_v23  ;;  %1063 = vmatpush3.bf16.msra.mxu0 %v583_v37 }
 0x2b5   :  { %v584_v42 = vpack.c.bf16 %v573_v43, %v572_v45 }
 0x2b7   :  { %v1054_v55 = vpop.f32.mrb[12].mxu1  ;;  %1064 = vmatprep.subr.bf16.mxu0 %v584_v42 }
 0x2b8   :  { %v549_v58 = vpop.f32.mrb[13].mxu1  ;;  %1065 = vmatpush3.bf16.msra.mxu0 %v584_v42  ;;  %v578_v62 = vmul.f32 %v1054_v55, %v1543_v53 }
 0x2b9   :  { %v1055_v61 = vpop.f32.mrb[14].mxu1  ;;  %1066 = vmatprep.subr.bf16.mxu0 %v585_v54  ;;  %v576_v9 = vmul.f32 %v549_v58, %v1537_v25  ;;  %v716_v25 = vld [vmem:[#allocation5 + $0x78] sm:$0xff] }
 0x2ba   :  { %v579_v11 = vmul.f32 %v1055_v61, %v1541_v51  ;;  %v552_v1 = vpop.f32.mrb[15].mxu1 }
 0x2bb   :  { %v577_v60 = vmul.f32 %v552_v1, %v1533_v18  ;;  %v715_v18 = vld [vmem:[#allocation5 + $0x70] sm:$0xff] }
 0x2bc   :  { %v587_v2 = vpack.c.bf16 %v579_v11, %v578_v62  ;;  %1067 = vmatpush3.bf16.msra.mxu0 %v585_v54  ;;  %v1172_v51 = vpack.c.bf16 %v716_v25, %v715_v18 }
 0x2bd   :  { %v586_v59 = vpack.c.bf16 %v577_v60, %v576_v9 }
 0x2be   :  { %1173 = vmatprep.subr.bf16.mxu1 %v1172_v51 }
 0x2bf   :  { %1068 = vmatprep.subr.bf16.mxu0 %v586_v59  ;;  %1175 = vmatpush3.bf16.msra.mxu1 %v1172_v51 }
 0x2c0   :  { %1069 = vmatpush3.bf16.msra.mxu0 %v586_v59 }
 0x2c1   :  { %1070 = vmatprep.subr.bf16.mxu0 %v587_v2 }
 0x2c4   :  { %1071 = vmatpush3.bf16.msra.mxu0 %v587_v2 }
 0x2c7   :  { %1073 = vmatmul.mubr.bf16.vlgmr.msra.gmra.mrb[16].mxu0 %v1479_v27 }
 0x2c8   :  { %1076 = vmatprep.mubr.bf16.mxu0 %v1481_v28 }
 0x2cf   :  { %1077 = vmatmul.mubr.bf16.gmra.mrb[20].mxu0 %v1485_v29 }
 0x2d0   :  { %1080 = vmatprep.mubr.bf16.mxu0 %v1487_v30 }
 0x2d7   :  { %1081 = vmatmul.mubr.bf16.gmra.mrb[24].mxu0 %v1491_v31 }
 0x2d8   :  { %1084 = vmatprep.mubr.bf16.mxu0 %v1493_v32 }
 0x2df   :  { %1085 = vmatmul.mubr.bf16.gmra.mrb[28].mxu0 %v1497_v33 }
 0x39a   :  { %v1074_v53 = vpop.f32.mrb[16].mxu0 }
 0x39b   :  { %v622_v3 = vpop.f32.mrb[17].mxu0  ;;  %v687_v30 = vmul.f32 %v1074_v53, %v1383_v34 }
 0x39c   :  { %v685_v27 = vmul.f32 %v622_v3, %v1385_v35  ;;  %v1075_v28 = vpop.f32.mrb[18].mxu0 }
 0x39d   :  { %v625_v4 = vpop.f32.mrb[19].mxu0  ;;  %v688_v31 = vmul.f32 %v1075_v28, %v1399_v40 }
 0x39e   :  { %v686_v29 = vmul.f32 %v625_v4, %v1401_v41  ;;  %1120 = vmatprep.mubr.f32.mxu1 %v685_v27 }
 0x3a0   :  { %1121 = vmatmul.mubr.f32.vlgmr.msra.gmra.mrb[16].mxu1 %v686_v29 }
 0x3a1   :  { %1123 = vmatprep.mubr.f32.mxu1 %v687_v30 }
 0x3a2   :  { %v1078_v32 = vpop.f32.mrb[20].mxu0 }
 0x3a3   :  { %v638_v33 = vpop.f32.mrb[21].mxu0  ;;  %v691_v12 = vmul.f32 %v1078_v32, %v1427_v57 }
 0x3a4   :  { %v689_v5 = vmul.f32 %v638_v33, %v1415_v50  ;;  %v1079_v8 = vpop.f32.mrb[22].mxu0  ;;  %1124 = vmatmul.mubr.f32.gmra.mrb[18].mxu1 %v688_v31 }
 0x3a5   :  { %v641_v10 = vpop.f32.mrb[23].mxu0  ;;  %v692_v34 = vmul.f32 %v1079_v8, %v1425_v56 }
 0x3a6   :  { %v690_v35 = vmul.f32 %v641_v10, %v1413_v49  ;;  %1126 = vmatprep.mubr.f32.mxu1 %v689_v5 }
 0x3a8   :  { %1127 = vmatmul.mubr.f32.gmra.mrb[20].mxu1 %v690_v35 }
 0x3a9   :  { %1129 = vmatprep.mubr.f32.mxu1 %v691_v12 }
 0x3aa   :  { %v1082_v41 = vpop.f32.mrb[24].mxu0 }
 0x3ab   :  { %v654_v15 = vpop.f32.mrb[25].mxu0  ;;  %v695_v19 = vmul.f32 %v1082_v41, %v1451_v7 }
 0x3ac   :  { %v693_v40 = vmul.f32 %v654_v15, %v1439_v0  ;;  %v1083_v16 = vpop.f32.mrb[26].mxu0  ;;  %1130 = vmatmul.mubr.f32.gmra.mrb[22].mxu1 %v692_v34 }
 0x3ad   :  { %v657_v17 = vpop.f32.mrb[27].mxu0  ;;  %v696_v49 = vmul.f32 %v1083_v16, %v1449_v6  ;;  %v911_v6 = vld [vmem:[%s1617_s4] ss:$0 sm:$0xff]  ;;  %s1273_s4 = smov [#allocation7]  }
 0x3ae   :  { %v694_v50 = vmul.f32 %v657_v17, %v1437_v63  ;;  %1132 = vmatprep.mubr.f32.mxu1 %v693_v40  ;;  %s890_s7 = sshll.u32 %s1273_s4, 4  ;;  %s891_s7 = int_to_ptr.vmem [resolvable:$true] %s890_s7 }
 0x3af   :  { %s1238_s8 = scalar_lea.vmem %s891_s7, 2048  ;;  %p1243_p3 = scmp.lt.s32.totalorder %s891_s7, %s891_s7 }
 0x3b0   :  { %1133 = vmatmul.mubr.f32.gmra.mrb[24].mxu1 %v694_v50  ;;  %p1239_p2 = scmp.ne.s32.totalorder %s891_s7, %s1238_s8  ;;  %p1244_p4 = scmp.lt.s32.totalorder %s1238_s8, %s1238_s8 }
 0x3b1   :  { %1135 = vmatprep.mubr.f32.mxu1 %v695_v19 }
 0x3b2   :  { %v1086_v57 = vpop.f32.mrb[28].mxu0  ;;  %p1245_p5 = por %p1244_p4, %p1243_p3 }
 0x3b3   :  { %v670_v22 = vpop.f32.mrb[29].mxu0  ;;  %v699_v38 = vmul.f32 %v1086_v57, %v1475_v21 }
 0x3b4   :  { %v697_v56 = vmul.f32 %v670_v22, %v1463_v14  ;;  %v1087_v24 = vpop.f32.mrb[30].mxu0  ;;  %1136 = vmatmul.mubr.f32.gmra.mrb[26].mxu1 %v696_v49  ;;  %p1246_p6 = pnand %p1245_p5, %p1239_p2 }
 0x3b5   :  { %v673_v39 = vpop.f32.mrb[31].mxu0  ;;  %v700_v63 = vmul.f32 %v1087_v24, %v1473_v20 }
 0x3b6   :  { %v698_v0 = vmul.f32 %v673_v39, %v1461_v13  ;;  %1138 = vmatprep.mubr.f32.mxu1 %v697_v56 }
 0x3b8   :  { %1139 = vmatmul.mubr.f32.gmra.mrb[28].mxu1 %v698_v0 }
 0x3b9   :  { %1141 = vmatprep.mubr.f32.mxu1 %v699_v38 }
 0x3bc   :  { %1142 = vmatmul.mubr.f32.gmra.mrb[30].mxu1 %v700_v63 }
 0x473   :  { %v1122_v7 = vpop.f32.mrb[16].mxu1 }
 0x474   :  { %v796_v26 = vadd.f32 %v1122_v7, %v911_v6  ;;  %v790_v14 = vpop.f32.mrb[17].mxu1 }
 0x475   :  { %v791_v37 = vadd.f32 %v911_v6, %v790_v14 }
 0x476   :  { %870 = vst [vmem:[#allocation7 + $0x8] sm:$0xff] %v796_v26 }
 0x477   :  { %869 = vst [vmem:[#allocation7] sm:$0xff] %v791_v37  ;;  %v1125_v36 = vpop.f32.mrb[18].mxu1 }
 0x478   :  { %v806_v13 = vadd.f32 %v1125_v36, %v911_v6  ;;  %v800_v44 = vpop.f32.mrb[19].mxu1 }
 0x479   :  { %v801_v46 = vadd.f32 %v911_v6, %v800_v44 }
 0x47a   :  { %872 = vst [vmem:[#allocation7 + $0x18] sm:$0xff] %v806_v13 }
 0x47b   :  { %871 = vst [vmem:[#allocation7 + $0x10] sm:$0xff] %v801_v46  ;;  %v1128_v21 = vpop.f32.mrb[20].mxu1 }
 0x47c   :  { %v816_v48 = vadd.f32 %v1128_v21, %v911_v6  ;;  %v810_v20 = vpop.f32.mrb[21].mxu1 }
 0x47d   :  { %v811_v23 = vadd.f32 %v911_v6, %v810_v20 }
 0x47e   :  { %874 = vst [vmem:[#allocation7 + $0x28] sm:$0xff] %v816_v48 }
 0x47f   :  { %873 = vst [vmem:[#allocation7 + $0x20] sm:$0xff] %v811_v23  ;;  %v1131_v47 = vpop.f32.mrb[22].mxu1 }
 0x480   :  { %v826_v52 = vadd.f32 %v1131_v47, %v911_v6  ;;  %v820_v45 = vpop.f32.mrb[23].mxu1 }
 0x481   :  { %v821_v43 = vadd.f32 %v911_v6, %v820_v45 }
 0x482   :  { %876 = vst [vmem:[#allocation7 + $0x38] sm:$0xff] %v826_v52 }
 0x483   :  { %875 = vst [vmem:[#allocation7 + $0x30] sm:$0xff] %v821_v43  ;;  %v1134_v54 = vpop.f32.mrb[24].mxu1 }
 0x484   :  { %v836_v42 = vadd.f32 %v1134_v54, %v911_v6  ;;  %v830_v55 = vpop.f32.mrb[25].mxu1 }
 0x485   :  { %v831_v58 = vadd.f32 %v911_v6, %v830_v55 }
 0x486   :  { %878 = vst [vmem:[#allocation7 + $0x48] sm:$0xff] %v836_v42 }
 0x487   :  { %877 = vst [vmem:[#allocation7 + $0x40] sm:$0xff] %v831_v58  ;;  %v1137_v61 = vpop.f32.mrb[26].mxu1 }
 0x488   :  { %v846_v62 = vadd.f32 %v1137_v61, %v911_v6  ;;  %v840_v11 = vpop.f32.mrb[27].mxu1 }
 0x489   :  { %v841_v1 = vadd.f32 %v911_v6, %v840_v11 }
 0x48a   :  { %880 = vst [vmem:[#allocation7 + $0x58] sm:$0xff] %v846_v62 }
 0x48b   :  { %879 = vst [vmem:[#allocation7 + $0x50] sm:$0xff] %v841_v1  ;;  %v1140_v9 = vpop.f32.mrb[28].mxu1 }
 0x48c   :  { %v856_v60 = vadd.f32 %v1140_v9, %v911_v6  ;;  %v850_v2 = vpop.f32.mrb[29].mxu1 }
 0x48d   :  { %v851_v59 = vadd.f32 %v911_v6, %v850_v2 }
 0x48e   :  { %882 = vst [vmem:[#allocation7 + $0x68] sm:$0xff] %v856_v60 }
 0x48f   :  { %881 = vst [vmem:[#allocation7 + $0x60] sm:$0xff] %v851_v59  ;;  %v1143_v18 = vpop.f32.mrb[30].mxu1 }
 0x490   :  { %v866_v25 = vadd.f32 %v1143_v18, %v911_v6  ;;  %v860_v51 = vpop.f32.mrb[31].mxu1 }
 0x491   :  { %v861_v53 = vadd.f32 %v911_v6, %v860_v51 }
 0x492   :  { %884 = vst [vmem:[#allocation7 + $0x78] sm:$0xff] %v866_v25 }
 0x493   :  { %883 = vst [vmem:[#allocation7 + $0x70] sm:$0xff] %v861_v53 }
 0x494   :  { %1249 = shalt.err (!%p1246_p6)
}
 0x495   :  { %s1250_s11 = scalar_lea.hbm %s1618_s5, 2048 }
 0x496   :  { %p1251_p7 = scmp.ne.s32.totalorder %s1618_s5, %s1250_s11  ;;  %p1254_p8 = scmp.lt.u32.totalorder %s1250_s11, %s1618_s5 }
 0x498   :  { %p1256_p9 = pnand %p1254_p8, %p1251_p7 }
 0x49a   :  { %1259 = shalt.err (!%p1256_p9)
}
 0x49b   :  { %896 = dma.vmem_to_hbm [thread:$0]  %s891_s7, 2048, %s1618_s5, [#allocation4], %s1270_s0, %s1270_s0, %s1271_s17  }
 0x49c   :  { %1264 = dma.done.wait [#allocation4], 2048  }
 0x49d   :  { %1265 = vsyncadd [#allocation4], 4294965248 }
 0x49e   :  { %900 = vsyncpa [#allocation3], 1 }
 0x49f   :  { %901 = vsyncpa [#allocation6], 1 }
 0x4a0   :  { %902 = vsyncpa [#allocation4], 1 }

</bundles_post_ra>
